<compile_context>
chip_gen: v6e
topology: v6e:2x2x1
jax: 0.10.0
libtpu: 0.0.40
codegen_flags: <defaults>
</compile_context>

<pallas_src>
import math

import jax
import jax.numpy as jnp
from jax.experimental import pallas as pl
from jax.experimental.pallas import tpu as pltpu

# ----------------------------- model config ---------------------------------
B = 2               # batch
S = 8               # sequence length
H = 32              # bert hidden_size
NUM_HEADS = 2
HEAD_DIM = H // NUM_HEADS
INTER = 64          # bert FFN intermediate (4*H)
NUM_LAYERS = 1      # args.bert_output_layer
VOCAB = 100
GPT_DIM = 48        # args.gpt_news_dim
MLP_HIDDEN = 3072   # nn.Linear(gpt_news_dim, 3072)
MLP_IN_PAD = 64     # gpt input padded: 48 feats + 1 bias lane + zeros
LN_EPS = 1e-12

# vec_pack row indices (each row = 128 lanes, zero padded)
_VROW_EMB_G, _VROW_EMB_B, _VROW_BP, _VROW_MLP_B2 = 0, 1, 2, 3
_VROW_LAYER0 = 4
_VROWS_PER_LAYER = 8            # bqkv, bo, ln1g, ln1b, bi, bf, ln2g, ln2b
VEC_ROWS = -(-(_VROW_LAYER0 + _VROWS_PER_LAYER * NUM_LAYERS) // 8) * 8

# wpack: per-layer 32-row blocks [wqkv | wo | wi] at lane offsets 0/128/256,
# plus one trailing 32-row block holding the pooler weight wp at lanes 0:H.
WPACK_COLS = 384


def _layer_norm(x, g, b):
    mean = jnp.mean(x, axis=-1, keepdims=True)
    var = jnp.mean((x - mean) ** 2, axis=-1, keepdims=True)
    return (x - mean) * jax.lax.rsqrt(var + LN_EPS) * g + b


# --------------------------- fused encoder kernel ----------------------------
def text_encoder_kernel(x_ref, bias_ref, vec_ref, wpack_ref, wf_ref,
                        title_ref, w1_ref, w2_ref, out_ref):
    f32, bf16 = jnp.float32, jnp.bfloat16

    def vec(row, width):                      # static (1, width) f32 slice
        return vec_ref[row:row + 1, :width]

    # ---- transform MLP: Linear(48,3072) -> ReLU -> Linear(3072,32) ----------
    # first-layer bias folded into w1 row GPT_DIM; weights fully VMEM resident
    h1 = jnp.dot(title_ref[...], w1_ref[...], preferred_element_type=f32)
    h1 = jnp.maximum(h1, 0.0)                 # ReLU
    mlp_out = jnp.dot(h1.astype(bf16), w2_ref[...],
                      preferred_element_type=f32) + vec(_VROW_MLP_B2, H)

    # ---- BERT encoder (embedding LayerNorm here; gathers in wrapper) --------
    x = _layer_norm(x_ref[...], vec(_VROW_EMB_G, H), vec(_VROW_EMB_B, H))
    bias = bias_ref[...]                      # (B*S, B*S) additive mask

    for l in range(NUM_LAYERS):               # static unroll
        r0 = l * H
        wqkv = wpack_ref[r0:r0 + H, 0:3 * H]          # (H, 3H)   bf16
        wo = wpack_ref[r0:r0 + H, 128:128 + H]        # (H, H)
        wi = wpack_ref[r0:r0 + H, 256:256 + INTER]    # (H, INTER)
        wf = wf_ref[l * INTER:(l + 1) * INTER, :]     # (INTER, H)
        vb = _VROW_LAYER0 + l * _VROWS_PER_LAYER

        # fused QKV projection: one (B*S,H) x (H,3H) MXU matmul
        qkv = jnp.dot(x.astype(bf16), wqkv,
                      preferred_element_type=f32) + vec(vb, 3 * H)

        attn_out = None
        for h in range(NUM_HEADS):             # static unroll (2 heads)
            qs = slice(h * HEAD_DIM, (h + 1) * HEAD_DIM)
            ks = slice(H + h * HEAD_DIM, H + (h + 1) * HEAD_DIM)
            vs = slice(2 * H + h * HEAD_DIM, 2 * H + (h + 1) * HEAD_DIM)
            qh = qkv[:, qs].astype(bf16)       # scale already folded into Wq/bq
            kh = qkv[:, ks].astype(bf16)
            vh = qkv[:, vs].astype(bf16)

            # flat 2-D attention: (B*S,D) @ (D,B*S) + block-diag padding bias
            s = jnp.dot(qh, kh.T, preferred_element_type=f32) + bias
            s = s - jnp.max(s, axis=-1, keepdims=True)
            p = jnp.exp(s)
            p = p * pl.reciprocal(jnp.sum(p, axis=-1, keepdims=True),
                                  approx=True)
            ctx = jnp.dot(p.astype(bf16), vh, preferred_element_type=f32)
            # concat(ctx_h) @ Wo == sum_h ctx_h @ Wo[h*D:(h+1)*D, :]
            part = jnp.dot(ctx.astype(bf16), wo[qs, :],
                           preferred_element_type=f32)
            attn_out = part if attn_out is None else attn_out + part
        attn_out = attn_out + vec(vb + 1, H)

        h1x = _layer_norm(x + attn_out, vec(vb + 2, H), vec(vb + 3, H))
        ffn = jnp.dot(h1x.astype(bf16), wi,
                      preferred_element_type=f32) + vec(vb + 4, INTER)
        # TODO(synk): HF BERT uses exact erf-based GELU; tanh approximation kept.
        ffn = jax.nn.gelu(ffn, approximate=True)
        ffn = jnp.dot(ffn.astype(bf16), wf,
                      preferred_element_type=f32) + vec(vb + 5, H)
        x = _layer_norm(h1x + ffn, vec(vb + 6, H), vec(vb + 7, H))

    # ---- tanh pooler on [CLS], write output by slice (no concat) ------------
    cls = x.reshape(B, S, H)[:, 0, :]                         # (B, H)
    wp = wpack_ref[NUM_LAYERS * H:(NUM_LAYERS + 1) * H, 0:H]
    pooled = jnp.tanh(jnp.dot(cls.astype(bf16), wp,
                              preferred_element_type=f32) + vec(_VROW_BP, H))
    out_ref[:, 0:H] = pooled
    out_ref[:, H:2 * H] = mlp_out


# ----------------------------- parameter init --------------------------------
def init_params(key):
    def norm(k, shape, std=0.02):
        return (std * jax.random.normal(k, shape)).astype(jnp.float32)

    keys = jax.random.split(key, 8 + 6 * NUM_LAYERS)
    it = iter(keys)
    scale = 1.0 / math.sqrt(HEAD_DIM)

    word_emb = norm(next(it), (VOCAB, H))
    pos_emb = norm(next(it), (S, H))
    type_emb = norm(next(it), (2, H))
    wp = norm(next(it), (H, H))
    mlp_w1 = norm(next(it), (GPT_DIM, MLP_HIDDEN))
    mlp_w2 = norm(next(it), (MLP_HIDDEN, H))
    mlp_b1 = jnp.zeros((MLP_HIDDEN,), jnp.float32)
    mlp_b2 = jnp.zeros((H,), jnp.float32)
    bp = jnp.zeros((H,), jnp.float32)
    emb_lng = jnp.ones((H,), jnp.float32)
    emb_lnb = jnp.zeros((H,), jnp.float32)

    def pad_row(v):
        v = jnp.asarray(v, jnp.float32).reshape(-1)
        return jnp.pad(v, (0, 128 - v.shape[0]))

    vec_rows = [pad_row(emb_lng), pad_row(emb_lnb), pad_row(bp), pad_row(mlp_b2)]
    wpack_blocks, wf_blocks = [], []
    for _ in range(NUM_LAYERS):
        wq = norm(next(it), (H, H))
        wk = norm(next(it), (H, H))
        wv = norm(next(it), (H, H))
        wo = norm(next(it), (H, H))
        wi = norm(next(it), (H, INTER))
        wf = norm(next(it), (INTER, H))
        bq = jnp.zeros((H,), jnp.float32)
        bk = jnp.zeros((H,), jnp.float32)
        bv = jnp.zeros((H,), jnp.float32)
        # fold 1/sqrt(head_dim) into the Q projection (weight AND bias)
        wqkv = jnp.concatenate([wq * scale, wk, wv], axis=1)
        bqkv = jnp.concatenate([bq * scale, bk, bv])
        bo = jnp.zeros((H,), jnp.float32)
        bi = jnp.zeros((INTER,), jnp.float32)
        bf = jnp.zeros((H,), jnp.float32)
        ln1g = jnp.ones((H,), jnp.float32)
        ln1b = jnp.zeros((H,), jnp.float32)
        ln2g = jnp.ones((H,), jnp.float32)
        ln2b = jnp.zeros((H,), jnp.float32)

        vec_rows += [pad_row(bqkv), pad_row(bo), pad_row(ln1g), pad_row(ln1b),
                     pad_row(bi), pad_row(bf), pad_row(ln2g), pad_row(ln2b)]

        blk = jnp.zeros((H, WPACK_COLS), jnp.float32)
        blk = blk.at[:, 0:3 * H].set(wqkv)
        blk = blk.at[:, 128:128 + H].set(wo)
        blk = blk.at[:, 256:256 + INTER].set(wi)
        wpack_blocks.append(blk)
        wf_blocks.append(wf)

    # trailing block: pooler weight at lanes 0:H
    wpack_blocks.append(jnp.zeros((H, WPACK_COLS), jnp.float32)
                        .at[:, 0:H].set(wp))

    while len(vec_rows) < VEC_ROWS:
        vec_rows.append(jnp.zeros((128,), jnp.float32))

    # transform-MLP first layer with bias folded in as row GPT_DIM
    w1_aug = jnp.zeros((MLP_IN_PAD, MLP_HIDDEN), jnp.float32)
    w1_aug = w1_aug.at[:GPT_DIM].set(mlp_w1)
    w1_aug = w1_aug.at[GPT_DIM].set(mlp_b1)

    return {
        'word_emb': word_emb, 'pos_emb': pos_emb, 'type_emb': type_emb,
        'vec_pack': jnp.stack(vec_rows, axis=0),                  # (16, 128) f32
        'wpack': jnp.concatenate(wpack_blocks, 0).astype(jnp.bfloat16),
        'wfpack': jnp.concatenate(wf_blocks, 0).astype(jnp.bfloat16),
        'w1_aug': w1_aug.astype(jnp.bfloat16),
        'w2': mlp_w2.astype(jnp.bfloat16),
    }


# ------------------------------- forward pass --------------------------------
@jax.jit
def text_encoder_forward(params, input_ids, attn_masks, title_emb):
    # Embedding gathers (glue) in plain JAX; embedding LayerNorm fused in the
    # kernel.  token_type_ids assumed all-zero (matches reference usage).
    # TODO(synk): dropout layers from HF BERT are identity in eval mode, omitted.
    x_emb = (params['word_emb'][input_ids]
             + params['pos_emb'][None, :, :]
             + params['type_emb'][0][None, None, :])
    x_flat = x_emb.reshape(B * S, H)             # layout plumbing in wrapper

    # additive attention bias: block-diagonal over batch, encodes key padding
    mask = attn_masks.astype(jnp.float32)        # (B, S) 1 keep / 0 pad
    keep = (jnp.eye(B, dtype=jnp.float32)[:, None, :, None]
            * mask[None, None, :, :])
    keep = jnp.broadcast_to(keep, (B, S, B, S)).reshape(B * S, B * S)
    attn_bias = (1.0 - keep) * (-1e9)

    # transform-MLP input padded to 64 lanes with a 1.0 "bias" lane at GPT_DIM
    title_aug = jnp.zeros((B, MLP_IN_PAD), jnp.float32)
    title_aug = title_aug.at[:, :GPT_DIM].set(title_emb)
    title_aug = title_aug.at[:, GPT_DIM].set(1.0)
    title_aug = title_aug.astype(jnp.bfloat16)

    args = (x_flat, attn_bias, params['vec_pack'], params['wpack'],
            params['wfpack'], title_aug, params['w1_aug'], params['w2'])
    in_specs = [pl.BlockSpec(a.shape, lambda i, n=a.ndim: (0,) * n)
                for a in args]

    return pl.pallas_call(
        text_encoder_kernel,
        out_shape=jax.ShapeDtypeStruct((B, 2 * H), jnp.float32),
        grid=(1,),
        in_specs=in_specs,
        out_specs=pl.BlockSpec((B, 2 * H), lambda i: (0, 0)),
        compiler_params=pltpu.CompilerParams(
            dimension_semantics=("arbitrary",)),
    )(*args)


if __name__ == "__main__":
    key = jax.random.PRNGKey(0)
    kp, k1, k2 = jax.random.split(key, 3)

    params = init_params(kp)
    input_ids = jax.random.randint(k1, (B, S), 0, VOCAB, dtype=jnp.int32)
    attn_masks = jnp.concatenate(
        [jnp.ones((B, S - 2), jnp.int32), jnp.zeros((B, 2), jnp.int32)], axis=-1)
    title_emb = jax.random.normal(k2, (B, GPT_DIM), dtype=jnp.float32)

    out = text_encoder_forward(params, input_ids, attn_masks, title_emb)
    out = jax.block_until_ready(out)

    assert out.shape == (B, 2 * H), out.shape
    assert out.dtype == jnp.float32
    assert bool(jnp.all(jnp.isfinite(out)))
    print("KERNEL_OK")
</pallas_src>

<mosaic_0001>
module attributes {stable_mosaic.version = 11 : i64} {
  func.func @text_encoder_kernel(%arg0: i32, %arg1: memref<16x32xf32, #tpu.memory_space<vmem>>, %arg2: memref<16x16xf32, #tpu.memory_space<vmem>>, %arg3: memref<16x128xf32, #tpu.memory_space<vmem>>, %arg4: memref<64x384xbf16, #tpu.memory_space<vmem>>, %arg5: memref<64x32xbf16, #tpu.memory_space<vmem>>, %arg6: memref<2x64xbf16, #tpu.memory_space<vmem>>, %arg7: memref<64x3072xbf16, #tpu.memory_space<vmem>>, %arg8: memref<3072x32xbf16, #tpu.memory_space<vmem>>, %arg9: memref<2x64xf32, #tpu.memory_space<vmem>>) attributes {dimension_semantics = [#tpu.dimension_semantics<arbitrary>], iteration_bounds = array<i64: 1>, scalar_prefetch = 0 : i64, scratch_operands = 0 : i64, tpu.core_type = #tpu.core_type<tc>, window_params = [{pipeline_mode = #tpu.pipeline_mode<synchronous>, transform_indices = @transform_0, window_bounds = array<i64: 16, 32>}, {pipeline_mode = #tpu.pipeline_mode<synchronous>, transform_indices = @transform_1, window_bounds = array<i64: 16, 16>}, {pipeline_mode = #tpu.pipeline_mode<synchronous>, transform_indices = @transform_2, window_bounds = array<i64: 16, 128>}, {pipeline_mode = #tpu.pipeline_mode<synchronous>, transform_indices = @transform_3, window_bounds = array<i64: 64, 384>}, {pipeline_mode = #tpu.pipeline_mode<synchronous>, transform_indices = @transform_4, window_bounds = array<i64: 64, 32>}, {pipeline_mode = #tpu.pipeline_mode<synchronous>, transform_indices = @transform_5, window_bounds = array<i64: 2, 64>}, {pipeline_mode = #tpu.pipeline_mode<synchronous>, transform_indices = @transform_6, window_bounds = array<i64: 64, 3072>}, {pipeline_mode = #tpu.pipeline_mode<synchronous>, transform_indices = @transform_7, window_bounds = array<i64: 3072, 32>}, {pipeline_mode = #tpu.pipeline_mode<synchronous>, transform_indices = @transform_8, window_bounds = array<i64: 2, 64>}]} {
    %c0 = arith.constant 0 : index
    %c0_0 = arith.constant 0 : index
    %0 = vector.load %arg6[%c0, %c0_0] : memref<2x64xbf16, #tpu.memory_space<vmem>>, vector<2x64xbf16>
    %c0_1 = arith.constant 0 : index
    %c0_2 = arith.constant 0 : index
    %1 = vector.load %arg7[%c0_1, %c0_2] : memref<64x3072xbf16, #tpu.memory_space<vmem>>, vector<64x3072xbf16>
    %cst = arith.constant dense<0.000000e+00> : vector<2x3072xf32>
    %2 = tpu.matmul %0, %1, %cst {dimension_numbers = #tpu.dot_dimension_numbers<[1], [0], [0], [1], [0, 0, 1, 1], [], []>} : vector<2x64xbf16>, vector<64x3072xbf16>, vector<2x3072xf32> -> vector<2x3072xf32>
    %cst_3 = arith.constant 0.000000e+00 : f32
    %3 = vector.broadcast %cst_3 : f32 to vector<2x3072xf32>
    %4 = arith.maximumf %2, %3 : vector<2x3072xf32>
    %5 = arith.truncf %4 : vector<2x3072xf32> to vector<2x3072xbf16>
    %c0_4 = arith.constant 0 : index
    %c0_5 = arith.constant 0 : index
    %6 = vector.load %arg8[%c0_4, %c0_5] : memref<3072x32xbf16, #tpu.memory_space<vmem>>, vector<3072x32xbf16>
    %cst_6 = arith.constant dense<0.000000e+00> : vector<2x32xf32>
    %7 = tpu.matmul %5, %6, %cst_6 {dimension_numbers = #tpu.dot_dimension_numbers<[1], [0], [0], [1], [0, 0, 1, 1], [], []>} : vector<2x3072xbf16>, vector<3072x32xbf16>, vector<2x32xf32> -> vector<2x32xf32>
    %c3 = arith.constant 3 : index
    %c0_7 = arith.constant 0 : index
    %8 = vector.load %arg3[%c3, %c0_7] : memref<16x128xf32, #tpu.memory_space<vmem>>, vector<1x32xf32>
    %9 = vector.broadcast %8 : vector<1x32xf32> to vector<2x32xf32>
    %10 = arith.addf %7, %9 : vector<2x32xf32>
    %c0_8 = arith.constant 0 : index
    %c0_9 = arith.constant 0 : index
    %11 = vector.load %arg1[%c0_8, %c0_9] : memref<16x32xf32, #tpu.memory_space<vmem>>, vector<16x32xf32>
    %c0_10 = arith.constant 0 : index
    %c0_11 = arith.constant 0 : index
    %12 = vector.load %arg3[%c0_10, %c0_11] : memref<16x128xf32, #tpu.memory_space<vmem>>, vector<1x32xf32>
    %c1 = arith.constant 1 : index
    %c0_12 = arith.constant 0 : index
    %13 = vector.load %arg3[%c1, %c0_12] : memref<16x128xf32, #tpu.memory_space<vmem>>, vector<1x32xf32>
    %cst_13 = arith.constant dense<0.000000e+00> : vector<16xf32>
    %14 = vector.multi_reduction <add>, %11, %cst_13 [1] : vector<16x32xf32> to vector<16xf32>
    %15 = vector.shape_cast %14 : vector<16xf32> to vector<16x1xf32>
    %cst_14 = arith.constant 3.200000e+01 : f32
    %16 = vector.broadcast %cst_14 : f32 to vector<16x1xf32>
    %17 = arith.divf %15, %16 : vector<16x1xf32>
    %18 = vector.broadcast %17 : vector<16x1xf32> to vector<16x32xf32>
    %19 = arith.subf %11, %18 : vector<16x32xf32>
    %20 = arith.mulf %19, %19 : vector<16x32xf32>
    %cst_15 = arith.constant dense<0.000000e+00> : vector<16xf32>
    %21 = vector.multi_reduction <add>, %20, %cst_15 [1] : vector<16x32xf32> to vector<16xf32>
    %22 = vector.shape_cast %21 : vector<16xf32> to vector<16x1xf32>
    %cst_16 = arith.constant 3.200000e+01 : f32
    %23 = vector.broadcast %cst_16 : f32 to vector<16x1xf32>
    %24 = arith.divf %22, %23 : vector<16x1xf32>
    %25 = vector.broadcast %17 : vector<16x1xf32> to vector<16x32xf32>
    %26 = arith.subf %11, %25 : vector<16x32xf32>
    %cst_17 = arith.constant 9.99999996E-13 : f32
    %27 = vector.broadcast %cst_17 : f32 to vector<16x1xf32>
    %28 = arith.addf %24, %27 : vector<16x1xf32>
    %29 = math.rsqrt %28 : vector<16x1xf32>
    %30 = vector.broadcast %29 : vector<16x1xf32> to vector<16x32xf32>
    %31 = arith.mulf %26, %30 : vector<16x32xf32>
    %32 = vector.broadcast %12 : vector<1x32xf32> to vector<16x32xf32>
    %33 = arith.mulf %31, %32 : vector<16x32xf32>
    %34 = vector.broadcast %13 : vector<1x32xf32> to vector<16x32xf32>
    %35 = arith.addf %33, %34 : vector<16x32xf32>
    %c0_18 = arith.constant 0 : index
    %c0_19 = arith.constant 0 : index
    %36 = vector.load %arg2[%c0_18, %c0_19] : memref<16x16xf32, #tpu.memory_space<vmem>>, vector<16x16xf32>
    %c0_20 = arith.constant 0 : index
    %c0_21 = arith.constant 0 : index
    %37 = vector.load %arg4[%c0_20, %c0_21] : memref<64x384xbf16, #tpu.memory_space<vmem>>, vector<32x96xbf16>
    %c0_22 = arith.constant 0 : index
    %c128 = arith.constant 128 : index
    %38 = vector.load %arg4[%c0_22, %c128] : memref<64x384xbf16, #tpu.memory_space<vmem>>, vector<32x32xbf16>
    %c0_23 = arith.constant 0 : index
    %c256 = arith.constant 256 : index
    %39 = vector.load %arg4[%c0_23, %c256] : memref<64x384xbf16, #tpu.memory_space<vmem>>, vector<32x64xbf16>
    %c0_24 = arith.constant 0 : index
    %c0_25 = arith.constant 0 : index
    %40 = vector.load %arg5[%c0_24, %c0_25] : memref<64x32xbf16, #tpu.memory_space<vmem>>, vector<64x32xbf16>
    %41 = arith.truncf %35 : vector<16x32xf32> to vector<16x32xbf16>
    %cst_26 = arith.constant dense<0.000000e+00> : vector<16x96xf32>
    %42 = tpu.matmul %41, %37, %cst_26 {dimension_numbers = #tpu.dot_dimension_numbers<[1], [0], [0], [1], [0, 0, 1, 1], [], []>} : vector<16x32xbf16>, vector<32x96xbf16>, vector<16x96xf32> -> vector<16x96xf32>
    %c4 = arith.constant 4 : index
    %c0_27 = arith.constant 0 : index
    %43 = vector.load %arg3[%c4, %c0_27] : memref<16x128xf32, #tpu.memory_space<vmem>>, vector<1x96xf32>
    %44 = vector.broadcast %43 : vector<1x96xf32> to vector<16x96xf32>
    %45 = arith.addf %42, %44 : vector<16x96xf32>
    %46 = vector.extract_strided_slice %45 {offsets = [0, 0], sizes = [16, 16], strides = [1, 1]} : vector<16x96xf32> to vector<16x16xf32>
    %47 = arith.truncf %46 : vector<16x16xf32> to vector<16x16xbf16>
    %48 = vector.extract_strided_slice %45 {offsets = [0, 32], sizes = [16, 16], strides = [1, 1]} : vector<16x96xf32> to vector<16x16xf32>
    %49 = arith.truncf %48 : vector<16x16xf32> to vector<16x16xbf16>
    %50 = vector.extract_strided_slice %45 {offsets = [0, 64], sizes = [16, 16], strides = [1, 1]} : vector<16x96xf32> to vector<16x16xf32>
    %51 = arith.truncf %50 : vector<16x16xf32> to vector<16x16xbf16>
    %52 = tpu.transpose %49, [1, 0] : vector<16x16xbf16> -> vector<16x16xbf16>
    %cst_28 = arith.constant dense<0.000000e+00> : vector<16x16xf32>
    %53 = tpu.matmul %47, %52, %cst_28 {dimension_numbers = #tpu.dot_dimension_numbers<[1], [0], [0], [1], [0, 0, 1, 1], [], []>} : vector<16x16xbf16>, vector<16x16xbf16>, vector<16x16xf32> -> vector<16x16xf32>
    %54 = arith.addf %53, %36 : vector<16x16xf32>
    %cst_29 = arith.constant dense<0xFF800000> : vector<16xf32>
    %55 = vector.multi_reduction <maximumf>, %54, %cst_29 [1] : vector<16x16xf32> to vector<16xf32>
    %56 = vector.shape_cast %55 : vector<16xf32> to vector<16x1xf32>
    %57 = vector.broadcast %56 : vector<16x1xf32> to vector<16x16xf32>
    %58 = arith.subf %54, %57 : vector<16x16xf32>
    %59 = math.exp %58 : vector<16x16xf32>
    %cst_30 = arith.constant dense<0.000000e+00> : vector<16xf32>
    %60 = vector.multi_reduction <add>, %59, %cst_30 [1] : vector<16x16xf32> to vector<16xf32>
    %61 = vector.shape_cast %60 : vector<16xf32> to vector<16x1xf32>
    %62 = tpu.reciprocal %61 {approx = true} : vector<16x1xf32> -> vector<16x1xf32>
    %63 = vector.broadcast %62 : vector<16x1xf32> to vector<16x16xf32>
    %64 = arith.mulf %59, %63 : vector<16x16xf32>
    %65 = arith.truncf %64 : vector<16x16xf32> to vector<16x16xbf16>
    %cst_31 = arith.constant dense<0.000000e+00> : vector<16x16xf32>
    %66 = tpu.matmul %65, %51, %cst_31 {dimension_numbers = #tpu.dot_dimension_numbers<[1], [0], [0], [1], [0, 0, 1, 1], [], []>} : vector<16x16xbf16>, vector<16x16xbf16>, vector<16x16xf32> -> vector<16x16xf32>
    %67 = arith.truncf %66 : vector<16x16xf32> to vector<16x16xbf16>
    %68 = vector.extract_strided_slice %38 {offsets = [0, 0], sizes = [16, 32], strides = [1, 1]} : vector<32x32xbf16> to vector<16x32xbf16>
    %cst_32 = arith.constant dense<0.000000e+00> : vector<16x32xf32>
    %69 = tpu.matmul %67, %68, %cst_32 {dimension_numbers = #tpu.dot_dimension_numbers<[1], [0], [0], [1], [0, 0, 1, 1], [], []>} : vector<16x16xbf16>, vector<16x32xbf16>, vector<16x32xf32> -> vector<16x32xf32>
    %70 = vector.extract_strided_slice %45 {offsets = [0, 16], sizes = [16, 16], strides = [1, 1]} : vector<16x96xf32> to vector<16x16xf32>
    %71 = arith.truncf %70 : vector<16x16xf32> to vector<16x16xbf16>
    %72 = vector.extract_strided_slice %45 {offsets = [0, 48], sizes = [16, 16], strides = [1, 1]} : vector<16x96xf32> to vector<16x16xf32>
    %73 = arith.truncf %72 : vector<16x16xf32> to vector<16x16xbf16>
    %74 = vector.extract_strided_slice %45 {offsets = [0, 80], sizes = [16, 16], strides = [1, 1]} : vector<16x96xf32> to vector<16x16xf32>
    %75 = arith.truncf %74 : vector<16x16xf32> to vector<16x16xbf16>
    %76 = tpu.transpose %73, [1, 0] : vector<16x16xbf16> -> vector<16x16xbf16>
    %cst_33 = arith.constant dense<0.000000e+00> : vector<16x16xf32>
    %77 = tpu.matmul %71, %76, %cst_33 {dimension_numbers = #tpu.dot_dimension_numbers<[1], [0], [0], [1], [0, 0, 1, 1], [], []>} : vector<16x16xbf16>, vector<16x16xbf16>, vector<16x16xf32> -> vector<16x16xf32>
    %78 = arith.addf %77, %36 : vector<16x16xf32>
    %cst_34 = arith.constant dense<0xFF800000> : vector<16xf32>
    %79 = vector.multi_reduction <maximumf>, %78, %cst_34 [1] : vector<16x16xf32> to vector<16xf32>
    %80 = vector.shape_cast %79 : vector<16xf32> to vector<16x1xf32>
    %81 = vector.broadcast %80 : vector<16x1xf32> to vector<16x16xf32>
    %82 = arith.subf %78, %81 : vector<16x16xf32>
    %83 = math.exp %82 : vector<16x16xf32>
    %cst_35 = arith.constant dense<0.000000e+00> : vector<16xf32>
    %84 = vector.multi_reduction <add>, %83, %cst_35 [1] : vector<16x16xf32> to vector<16xf32>
    %85 = vector.shape_cast %84 : vector<16xf32> to vector<16x1xf32>
    %86 = tpu.reciprocal %85 {approx = true} : vector<16x1xf32> -> vector<16x1xf32>
    %87 = vector.broadcast %86 : vector<16x1xf32> to vector<16x16xf32>
    %88 = arith.mulf %83, %87 : vector<16x16xf32>
    %89 = arith.truncf %88 : vector<16x16xf32> to vector<16x16xbf16>
    %cst_36 = arith.constant dense<0.000000e+00> : vector<16x16xf32>
    %90 = tpu.matmul %89, %75, %cst_36 {dimension_numbers = #tpu.dot_dimension_numbers<[1], [0], [0], [1], [0, 0, 1, 1], [], []>} : vector<16x16xbf16>, vector<16x16xbf16>, vector<16x16xf32> -> vector<16x16xf32>
    %91 = arith.truncf %90 : vector<16x16xf32> to vector<16x16xbf16>
    %92 = vector.extract_strided_slice %38 {offsets = [16, 0], sizes = [16, 32], strides = [1, 1]} : vector<32x32xbf16> to vector<16x32xbf16>
    %cst_37 = arith.constant dense<0.000000e+00> : vector<16x32xf32>
    %93 = tpu.matmul %91, %92, %cst_37 {dimension_numbers = #tpu.dot_dimension_numbers<[1], [0], [0], [1], [0, 0, 1, 1], [], []>} : vector<16x16xbf16>, vector<16x32xbf16>, vector<16x32xf32> -> vector<16x32xf32>
    %94 = arith.addf %69, %93 : vector<16x32xf32>
    %c5 = arith.constant 5 : index
    %c0_38 = arith.constant 0 : index
    %95 = vector.load %arg3[%c5, %c0_38] : memref<16x128xf32, #tpu.memory_space<vmem>>, vector<1x32xf32>
    %96 = vector.broadcast %95 : vector<1x32xf32> to vector<16x32xf32>
    %97 = arith.addf %94, %96 : vector<16x32xf32>
    %98 = arith.addf %35, %97 : vector<16x32xf32>
    %c6 = arith.constant 6 : index
    %c0_39 = arith.constant 0 : index
    %99 = vector.load %arg3[%c6, %c0_39] : memref<16x128xf32, #tpu.memory_space<vmem>>, vector<1x32xf32>
    %c7 = arith.constant 7 : index
    %c0_40 = arith.constant 0 : index
    %100 = vector.load %arg3[%c7, %c0_40] : memref<16x128xf32, #tpu.memory_space<vmem>>, vector<1x32xf32>
    %cst_41 = arith.constant dense<0.000000e+00> : vector<16xf32>
    %101 = vector.multi_reduction <add>, %98, %cst_41 [1] : vector<16x32xf32> to vector<16xf32>
    %102 = vector.shape_cast %101 : vector<16xf32> to vector<16x1xf32>
    %cst_42 = arith.constant 3.200000e+01 : f32
    %103 = vector.broadcast %cst_42 : f32 to vector<16x1xf32>
    %104 = arith.divf %102, %103 : vector<16x1xf32>
    %105 = vector.broadcast %104 : vector<16x1xf32> to vector<16x32xf32>
    %106 = arith.subf %98, %105 : vector<16x32xf32>
    %107 = arith.mulf %106, %106 : vector<16x32xf32>
    %cst_43 = arith.constant dense<0.000000e+00> : vector<16xf32>
    %108 = vector.multi_reduction <add>, %107, %cst_43 [1] : vector<16x32xf32> to vector<16xf32>
    %109 = vector.shape_cast %108 : vector<16xf32> to vector<16x1xf32>
    %cst_44 = arith.constant 3.200000e+01 : f32
    %110 = vector.broadcast %cst_44 : f32 to vector<16x1xf32>
    %111 = arith.divf %109, %110 : vector<16x1xf32>
    %112 = vector.broadcast %104 : vector<16x1xf32> to vector<16x32xf32>
    %113 = arith.subf %98, %112 : vector<16x32xf32>
    %cst_45 = arith.constant 9.99999996E-13 : f32
    %114 = vector.broadcast %cst_45 : f32 to vector<16x1xf32>
    %115 = arith.addf %111, %114 : vector<16x1xf32>
    %116 = math.rsqrt %115 : vector<16x1xf32>
    %117 = vector.broadcast %116 : vector<16x1xf32> to vector<16x32xf32>
    %118 = arith.mulf %113, %117 : vector<16x32xf32>
    %119 = vector.broadcast %99 : vector<1x32xf32> to vector<16x32xf32>
    %120 = arith.mulf %118, %119 : vector<16x32xf32>
    %121 = vector.broadcast %100 : vector<1x32xf32> to vector<16x32xf32>
    %122 = arith.addf %120, %121 : vector<16x32xf32>
    %123 = arith.truncf %122 : vector<16x32xf32> to vector<16x32xbf16>
    %cst_46 = arith.constant dense<0.000000e+00> : vector<16x64xf32>
    %124 = tpu.matmul %123, %39, %cst_46 {dimension_numbers = #tpu.dot_dimension_numbers<[1], [0], [0], [1], [0, 0, 1, 1], [], []>} : vector<16x32xbf16>, vector<32x64xbf16>, vector<16x64xf32> -> vector<16x64xf32>
    %c8 = arith.constant 8 : index
    %c0_47 = arith.constant 0 : index
    %125 = vector.load %arg3[%c8, %c0_47] : memref<16x128xf32, #tpu.memory_space<vmem>>, vector<1x64xf32>
    %126 = vector.broadcast %125 : vector<1x64xf32> to vector<16x64xf32>
    %127 = arith.addf %124, %126 : vector<16x64xf32>
    %128 = arith.mulf %127, %127 : vector<16x64xf32>
    %129 = arith.mulf %127, %128 : vector<16x64xf32>
    %cst_48 = arith.constant 4.471500e-02 : f32
    %130 = vector.broadcast %cst_48 : f32 to vector<16x64xf32>
    %131 = arith.mulf %130, %129 : vector<16x64xf32>
    %132 = arith.addf %127, %131 : vector<16x64xf32>
    %cst_49 = arith.constant 0.797884583 : f32
    %133 = vector.broadcast %cst_49 : f32 to vector<16x64xf32>
    %134 = arith.mulf %133, %132 : vector<16x64xf32>
    %135 = math.tanh %134 : vector<16x64xf32>
    %cst_50 = arith.constant 1.000000e+00 : f32
    %136 = vector.broadcast %cst_50 : f32 to vector<16x64xf32>
    %137 = arith.addf %136, %135 : vector<16x64xf32>
    %cst_51 = arith.constant 5.000000e-01 : f32
    %138 = vector.broadcast %cst_51 : f32 to vector<16x64xf32>
    %139 = arith.mulf %138, %137 : vector<16x64xf32>
    %140 = arith.mulf %127, %139 : vector<16x64xf32>
    %141 = arith.truncf %140 : vector<16x64xf32> to vector<16x64xbf16>
    %cst_52 = arith.constant dense<0.000000e+00> : vector<16x32xf32>
    %142 = tpu.matmul %141, %40, %cst_52 {dimension_numbers = #tpu.dot_dimension_numbers<[1], [0], [0], [1], [0, 0, 1, 1], [], []>} : vector<16x64xbf16>, vector<64x32xbf16>, vector<16x32xf32> -> vector<16x32xf32>
    %c9 = arith.constant 9 : index
    %c0_53 = arith.constant 0 : index
    %143 = vector.load %arg3[%c9, %c0_53] : memref<16x128xf32, #tpu.memory_space<vmem>>, vector<1x32xf32>
    %144 = vector.broadcast %143 : vector<1x32xf32> to vector<16x32xf32>
    %145 = arith.addf %142, %144 : vector<16x32xf32>
    %146 = arith.addf %122, %145 : vector<16x32xf32>
    %c10 = arith.constant 10 : index
    %c0_54 = arith.constant 0 : index
    %147 = vector.load %arg3[%c10, %c0_54] : memref<16x128xf32, #tpu.memory_space<vmem>>, vector<1x32xf32>
    %c11 = arith.constant 11 : index
    %c0_55 = arith.constant 0 : index
    %148 = vector.load %arg3[%c11, %c0_55] : memref<16x128xf32, #tpu.memory_space<vmem>>, vector<1x32xf32>
    %cst_56 = arith.constant dense<0.000000e+00> : vector<16xf32>
    %149 = vector.multi_reduction <add>, %146, %cst_56 [1] : vector<16x32xf32> to vector<16xf32>
    %150 = vector.shape_cast %149 : vector<16xf32> to vector<16x1xf32>
    %cst_57 = arith.constant 3.200000e+01 : f32
    %151 = vector.broadcast %cst_57 : f32 to vector<16x1xf32>
    %152 = arith.divf %150, %151 : vector<16x1xf32>
    %153 = vector.broadcast %152 : vector<16x1xf32> to vector<16x32xf32>
    %154 = arith.subf %146, %153 : vector<16x32xf32>
    %155 = arith.mulf %154, %154 : vector<16x32xf32>
    %cst_58 = arith.constant dense<0.000000e+00> : vector<16xf32>
    %156 = vector.multi_reduction <add>, %155, %cst_58 [1] : vector<16x32xf32> to vector<16xf32>
    %157 = vector.shape_cast %156 : vector<16xf32> to vector<16x1xf32>
    %cst_59 = arith.constant 3.200000e+01 : f32
    %158 = vector.broadcast %cst_59 : f32 to vector<16x1xf32>
    %159 = arith.divf %157, %158 : vector<16x1xf32>
    %160 = vector.broadcast %152 : vector<16x1xf32> to vector<16x32xf32>
    %161 = arith.subf %146, %160 : vector<16x32xf32>
    %cst_60 = arith.constant 9.99999996E-13 : f32
    %162 = vector.broadcast %cst_60 : f32 to vector<16x1xf32>
    %163 = arith.addf %159, %162 : vector<16x1xf32>
    %164 = math.rsqrt %163 : vector<16x1xf32>
    %165 = vector.broadcast %164 : vector<16x1xf32> to vector<16x32xf32>
    %166 = arith.mulf %161, %165 : vector<16x32xf32>
    %167 = vector.broadcast %147 : vector<1x32xf32> to vector<16x32xf32>
    %168 = arith.mulf %166, %167 : vector<16x32xf32>
    %169 = vector.broadcast %148 : vector<1x32xf32> to vector<16x32xf32>
    %170 = arith.addf %168, %169 : vector<16x32xf32>
    %171 = vector.shape_cast %170 : vector<16x32xf32> to vector<2x8x32xf32>
    %172 = vector.extract_strided_slice %171 {offsets = [0, 0, 0], sizes = [2, 1, 32], strides = [1, 1, 1]} : vector<2x8x32xf32> to vector<2x1x32xf32>
    %173 = vector.shape_cast %172 : vector<2x1x32xf32> to vector<2x32xf32>
    %c32 = arith.constant 32 : index
    %c0_61 = arith.constant 0 : index
    %174 = vector.load %arg4[%c32, %c0_61] : memref<64x384xbf16, #tpu.memory_space<vmem>>, vector<32x32xbf16>
    %175 = arith.truncf %173 : vector<2x32xf32> to vector<2x32xbf16>
    %cst_62 = arith.constant dense<0.000000e+00> : vector<2x32xf32>
    %176 = tpu.matmul %175, %174, %cst_62 {dimension_numbers = #tpu.dot_dimension_numbers<[1], [0], [0], [1], [0, 0, 1, 1], [], []>} : vector<2x32xbf16>, vector<32x32xbf16>, vector<2x32xf32> -> vector<2x32xf32>
    %c2 = arith.constant 2 : index
    %c0_63 = arith.constant 0 : index
    %177 = vector.load %arg3[%c2, %c0_63] : memref<16x128xf32, #tpu.memory_space<vmem>>, vector<1x32xf32>
    %178 = vector.broadcast %177 : vector<1x32xf32> to vector<2x32xf32>
    %179 = arith.addf %176, %178 : vector<2x32xf32>
    %180 = math.tanh %179 : vector<2x32xf32>
    %c0_64 = arith.constant 0 : index
    %c0_65 = arith.constant 0 : index
    %181 = vector.load %arg9[%c0_64, %c0_65] : memref<2x64xf32, #tpu.memory_space<vmem>>, vector<2x32xf32>
    tpu.vector_store %arg9[%c0_64, %c0_65], %180 {strides = array<i32>} : memref<2x64xf32, #tpu.memory_space<vmem>>, vector<2x32xf32>,
    %c0_66 = arith.constant 0 : index
    %c32_67 = arith.constant 32 : index
    %182 = vector.load %arg9[%c0_66, %c32_67] : memref<2x64xf32, #tpu.memory_space<vmem>>, vector<2x32xf32>
    tpu.vector_store %arg9[%c0_66, %c32_67], %10 {strides = array<i32>} : memref<2x64xf32, #tpu.memory_space<vmem>>, vector<2x32xf32>,
    return
  }
  func.func @transform_0(%arg0: i32) -> (i32, i32) {
    %c0_i32 = arith.constant 0 : i32
    %c0_i32_0 = arith.constant 0 : i32
    %c0_i32_1 = arith.constant 0 : i32
    return %c0_i32, %c0_i32_0 : i32, i32
  }
  func.func @transform_1(%arg0: i32) -> (i32, i32) {
    %c0_i32 = arith.constant 0 : i32
    %c0_i32_0 = arith.constant 0 : i32
    %c0_i32_1 = arith.constant 0 : i32
    return %c0_i32, %c0_i32_0 : i32, i32
  }
  func.func @transform_2(%arg0: i32) -> (i32, i32) {
    %c0_i32 = arith.constant 0 : i32
    %c0_i32_0 = arith.constant 0 : i32
    %c0_i32_1 = arith.constant 0 : i32
    return %c0_i32, %c0_i32_0 : i32, i32
  }
  func.func @transform_3(%arg0: i32) -> (i32, i32) {
    %c0_i32 = arith.constant 0 : i32
    %c0_i32_0 = arith.constant 0 : i32
    %c0_i32_1 = arith.constant 0 : i32
    return %c0_i32, %c0_i32_0 : i32, i32
  }
  func.func @transform_4(%arg0: i32) -> (i32, i32) {
    %c0_i32 = arith.constant 0 : i32
    %c0_i32_0 = arith.constant 0 : i32
    %c0_i32_1 = arith.constant 0 : i32
    return %c0_i32, %c0_i32_0 : i32, i32
  }
  func.func @transform_5(%arg0: i32) -> (i32, i32) {
    %c0_i32 = arith.constant 0 : i32
    %c0_i32_0 = arith.constant 0 : i32
    %c0_i32_1 = arith.constant 0 : i32
    return %c0_i32, %c0_i32_0 : i32, i32
  }
  func.func @transform_6(%arg0: i32) -> (i32, i32) {
    %c0_i32 = arith.constant 0 : i32
    %c0_i32_0 = arith.constant 0 : i32
    %c0_i32_1 = arith.constant 0 : i32
    return %c0_i32, %c0_i32_0 : i32, i32
  }
  func.func @transform_7(%arg0: i32) -> (i32, i32) {
    %c0_i32 = arith.constant 0 : i32
    %c0_i32_0 = arith.constant 0 : i32
    %c0_i32_1 = arith.constant 0 : i32
    return %c0_i32, %c0_i32_0 : i32, i32
  }
  func.func @transform_8(%arg0: i32) -> (i32, i32) {
    %c0_i32 = arith.constant 0 : i32
    %c0_i32_0 = arith.constant 0 : i32
    %c0_i32_1 = arith.constant 0 : i32
    return %c0_i32, %c0_i32_0 : i32, i32
  }
}

</mosaic_0001>

<bundles_post_ra>
// kernel: text_encoder_forward.1
= control target key start
LH: loop header
LB: loop body
LE: loop exit
PB: predicated region body
PF: predicated region fallthrough
CT: control target
= control target key end

     0   :  { %vm3177_vm0 = vcmask 261120   ;;  %v4956_v9 = vmov 0   ;;  %vm608_vm1 = vcmask 523264   ;;  %s6145_s0 = inlined_call_operand.vmem [shape: f32[16,32], index: 0, kind: input, shape index: {}]   ;;  %s6146_s1 = inlined_call_operand.vmem [shape: f32[16,16], index: 1, kind: input, shape index: {}]   ;;  %s6147_s2 = inlined_call_operand.vmem [shape: f32[16,128], index: 2, kind: input, shape index: {}]   ;;  %s6148_s3 = inlined_call_operand.vmem [shape: bf16[64,384], index: 3, kind: input, shape index: {}]   ;;  %s6149_s4 = inlined_call_operand.vmem [shape: bf16[64,32], index: 4, kind: input, shape index: {}]   ;;  %s6150_s5 = inlined_call_operand.vmem [shape: bf16[2,64], index: 5, kind: input, shape index: {}]   ;;  %s6151_s6 = inlined_call_operand.vmem [shape: bf16[64,3072], index: 6, kind: input, shape index: {}]   ;;  %s6152_s7 = inlined_call_operand.vmem [shape: bf16[3072,32], index: 7, kind: input, shape index: {}]   ;;  %s6153_s8 = inlined_call_operand.hbm [shape: f32[2,64], index: 8, kind: output, shape index: {}]  }
   0x1   :  { %v3173_v0 = vld [vmem:[%s6145_s0] sm:$0xff]  ;;  %v105_v6 = vld [vmem:[%s6151_s6 + $0x248] sm:$0xff]  ;;  %644 = vmatprep.mubr.bf16.mxu0 %v4956_v9  ;;  %685 = vmatprep.mubr.bf16.mxu1 %v4956_v9  ;;  %v106_v35 = vld [vmem:[%s6151_s6 + $0x250] sm:$0xff] }
   0x2   :  { %v104_v1 = vld [vmem:[%s6151_s6 + $0x240] sm:$0xff]  ;;  %v3178_v3 = vsel %vm3177_vm0, %v3173_v0, 0.0  ;;  %v117_v7 = vld [vmem:[%s6151_s6 + $0x2a8] sm:$0xff]  ;;  %v118_v36 = vld [vmem:[%s6151_s6 + $0x2b0] sm:$0xff] }
   0x3   :  { %v116_v2 = vld [vmem:[%s6151_s6 + $0x2a0] sm:$0xff]  ;;  %v3174_v8 = vld [vmem:[%s6145_s0 + $0x8] sm:$0xff]  ;;  %3179 = vadd.xlane.f32.xlu0 %v3178_v3  ;;  %v4063_v10 = vcombine.high %v105_v6, %v117_v7  ;;  %v4062_v11 = vcombine.low %v105_v6, %v117_v7  ;;  %v107_v37 = vld [vmem:[%s6151_s6 + $0x258] sm:$0xff]  ;;  %v4065_v41 = vcombine.high %v106_v35, %v118_v36  ;;  %v4064_v48 = vcombine.low %v106_v35, %v118_v36 }
   0x4   :  { %v4061_v4 = vcombine.high %v104_v1, %v116_v2  ;;  %v4060_v5 = vcombine.low %v104_v1, %v116_v2  ;;  %v80_v12 = vld [vmem:[%s6151_s6 + $0x180] sm:$0xff]  ;;  %v81_v14 = vld [vmem:[%s6151_s6 + $0x188] sm:$0xff]  ;;  %v3181_v15 = vsel %vm3177_vm0, %v3174_v8, 0.0  ;;  %v119_v38 = vld [vmem:[%s6151_s6 + $0x2b8] sm:$0xff] }
   0x5   :  { %v92_v13 = vld [vmem:[%s6151_s6 + $0x1e0] sm:$0xff]  ;;  %v93_v17 = vld [vmem:[%s6151_s6 + $0x1e8] sm:$0xff]  ;;  %661 = vmatprep.subr.bf16.mxu1 %v4063_v10  ;;  %v82_v42 = vld [vmem:[%s6151_s6 + $0x190] sm:$0xff]  ;;  %v4067_v44 = vcombine.high %v107_v37, %v119_v38  ;;  %v4066_v50 = vcombine.low %v107_v37, %v119_v38 }
   0x6   :  { %620 = vmatprep.subr.bf16.mxu0 %v4061_v4  ;;  %v4037_v16 = vcombine.high %v80_v12, %v92_v13  ;;  %v56_v18 = vld [vmem:[%s6151_s6 + $0xc0] sm:$0xff]  ;;  %v4036_v20 = vcombine.low %v80_v12, %v92_v13  ;;  %v4039_v21 = vcombine.high %v81_v14, %v93_v17  ;;  %v57_v22 = vld [vmem:[%s6151_s6 + $0xc8] sm:$0xff]  ;;  %662 = vmatpush1.bf16.msra.mxu1 %v4062_v11  ;;  %v94_v43 = vld [vmem:[%s6151_s6 + $0x1f0] sm:$0xff] }
   0x7   :  { %v68_v19 = vld [vmem:[%s6151_s6 + $0x120] sm:$0xff]  ;;  %621 = vmatpush1.bf16.msra.mxu0 %v4060_v5  ;;  %v69_v23 = vld [vmem:[%s6151_s6 + $0x128] sm:$0xff]  ;;  %v4038_v24 = vcombine.low %v81_v14, %v93_v17  ;;  %3182 = vadd.xlane.f32.xlu0 %v3181_v15  ;;  %v83_v45 = vld [vmem:[%s6151_s6 + $0x198] sm:$0xff]  ;;  %v4041_v49 = vcombine.high %v82_v42, %v94_v43  ;;  %v4040_v56 = vcombine.low %v82_v42, %v94_v43 }
   0x8   :  { %622 = vmatprep.subr.bf16.mxu0 %v4037_v16  ;;  %v4013_v25 = vcombine.high %v56_v18, %v68_v19  ;;  %663 = vmatprep.subr.bf16.mxu1 %v4039_v21  ;;  %v4015_v26 = vcombine.high %v57_v22, %v69_v23  ;;  %v32_v27 = vld [vmem:[%s6151_s6] sm:$0xff]  ;;  %v33_v29 = vld [vmem:[%s6151_s6 + $0x8] sm:$0xff]  ;;  %v4012_v31 = vcombine.low %v56_v18, %v68_v19  ;;  %v95_v46 = vld [vmem:[%s6151_s6 + $0x1f8] sm:$0xff] }
   0x9   :  { %v44_v28 = vld [vmem:[%s6151_s6 + $0x60] sm:$0xff]  ;;  %v45_v30 = vld [vmem:[%s6151_s6 + $0x68] sm:$0xff]  ;;  %v4014_v32 = vcombine.low %v57_v22, %v69_v23  ;;  %v58_v51 = vld [vmem:[%s6151_s6 + $0xd0] sm:$0xff]  ;;  %v4043_v53 = vcombine.high %v83_v45, %v95_v46  ;;  %v4042_v58 = vcombine.low %v83_v45, %v95_v46 }
   0xa   :  { %664 = vmatpush1.bf16.msra.mxu1 %v4038_v24  ;;  %v3989_v33 = vcombine.high %v32_v27, %v44_v28  ;;  %v3991_v34 = vcombine.high %v33_v29, %v45_v30  ;;  %v3988_v39 = vcombine.low %v32_v27, %v44_v28  ;;  %v3990_v40 = vcombine.low %v33_v29, %v45_v30  ;;  %v5096_v47 = vld [vmem:[%s6150_s5] sm:$0x1]  ;;  %v70_v52 = vld [vmem:[%s6151_s6 + $0x130] sm:$0xff]  ;;  %v59_v54 = vld [vmem:[%s6151_s6 + $0xd8] sm:$0xff] }
   0xb   :  { %623 = vmatpush1.bf16.msra.mxu0 %v4036_v20  ;;  %665 = vmatprep.subr.bf16.mxu1 %v4015_v26  ;;  %v71_v55 = vld [vmem:[%s6151_s6 + $0x138] sm:$0xff]  ;;  %v4017_v57 = vcombine.high %v58_v51, %v70_v52  ;;  %v34_v59 = vld [vmem:[%s6151_s6 + $0x10] sm:$0xff]  ;;  %v4016_v0 = vcombine.low %v58_v51, %v70_v52  ;;  %v108_v4 = vld [vmem:[%s6151_s6 + $0x260] sm:$0xff] }
   0xc   :  { %624 = vmatprep.subr.bf16.mxu0 %v4013_v25  ;;  %v46_v60 = vld [vmem:[%s6151_s6 + $0x70] sm:$0xff]  ;;  %v4019_v61 = vcombine.high %v59_v54, %v71_v55  ;;  %v35_v62 = vld [vmem:[%s6151_s6 + $0x18] sm:$0xff]  ;;  %v4018_v2 = vcombine.low %v59_v54, %v71_v55  ;;  %v120_v5 = vld [vmem:[%s6151_s6 + $0x2c0] sm:$0xff] }
   0xd   :  { %v47_v63 = vld [vmem:[%s6151_s6 + $0x78] sm:$0xff]  ;;  %v3993_v1 = vcombine.high %v34_v59, %v46_v60  ;;  %v109_v6 = vld [vmem:[%s6151_s6 + $0x268] sm:$0xff]  ;;  %v3992_v8 = vcombine.low %v34_v59, %v46_v60  ;;  %v4069_v11 = vcombine.high %v108_v4, %v120_v5  ;;  %v84_v12 = vld [vmem:[%s6151_s6 + $0x1a0] sm:$0xff]  ;;  %v4068_v17 = vcombine.low %v108_v4, %v120_v5 }
   0xe   :  { %666 = vmatpush1.bf16.msra.mxu1 %v4014_v32  ;;  %v3995_v3 = vcombine.high %v35_v62, %v47_v63  ;;  %v121_v7 = vld [vmem:[%s6151_s6 + $0x2c8] sm:$0xff]  ;;  %v3994_v10 = vcombine.low %v35_v62, %v47_v63  ;;  %v96_v13 = vld [vmem:[%s6151_s6 + $0x200] sm:$0xff]  ;;  %v122_v37 = vld [vmem:[%s6151_s6 + $0x2d0] sm:$0xff] }
   0xf   :  { %625 = vmatpush1.bf16.msra.mxu0 %v4012_v31  ;;  %667 = vmatprep.subr.bf16.mxu1 %v3991_v34  ;;  %v4071_v14 = vcombine.high %v109_v6, %v121_v7  ;;  %v85_v15 = vld [vmem:[%s6151_s6 + $0x1a8] sm:$0xff]  ;;  %v60_v18 = vld [vmem:[%s6151_s6 + $0xe0] sm:$0xff]  ;;  %v4045_v19 = vcombine.high %v84_v12, %v96_v13  ;;  %v4070_v20 = vcombine.low %v109_v6, %v121_v7  ;;  %v110_v34 = vld [vmem:[%s6151_s6 + $0x270] sm:$0xff] }
  0x10   :  { %626 = vmatprep.subr.bf16.mxu0 %v3989_v33  ;;  %v97_v16 = vld [vmem:[%s6151_s6 + $0x208] sm:$0xff]  ;;  %v72_v21 = vld [vmem:[%s6151_s6 + $0x140] sm:$0xff]  ;;  %v4044_v25 = vcombine.low %v84_v12, %v96_v13  ;;  %v86_v42 = vld [vmem:[%s6151_s6 + $0x1b0] sm:$0xff] }
  0x11   :  { %v4047_v22 = vcombine.high %v85_v15, %v97_v16  ;;  %v61_v23 = vld [vmem:[%s6151_s6 + $0xe8] sm:$0xff]  ;;  %v36_v26 = vld [vmem:[%s6151_s6 + $0x20] sm:$0xff]  ;;  %v4021_v27 = vcombine.high %v60_v18, %v72_v21  ;;  %v4046_v28 = vcombine.low %v85_v15, %v97_v16  ;;  %v4020_v33 = vcombine.low %v60_v18, %v72_v21  ;;  %v98_v45 = vld [vmem:[%s6151_s6 + $0x210] sm:$0xff] }
  0x12   :  { %668 = vmatpush1.bf16.msra.mxu1 %v3990_v40  ;;  %v73_v24 = vld [vmem:[%s6151_s6 + $0x148] sm:$0xff]  ;;  %v48_v29 = vld [vmem:[%s6151_s6 + $0x80] sm:$0xff]  ;;  %v123_v40 = vld [vmem:[%s6151_s6 + $0x2d8] sm:$0xff]  ;;  %v4049_v52 = vcombine.high %v86_v42, %v98_v45 }
  0x13   :  { %627 = vmatpush1.bf16.msra.mxu0 %v3988_v39  ;;  %743 = vmatprep.subr.bf16.mxu1 %v4067_v44  ;;  %v4023_v30 = vcombine.high %v61_v23, %v73_v24  ;;  %v37_v31 = vld [vmem:[%s6151_s6 + $0x28] sm:$0xff]  ;;  %v3997_v35 = vcombine.high %v36_v26, %v48_v29  ;;  %v4022_v36 = vcombine.low %v61_v23, %v73_v24  ;;  %v111_v39 = vld [vmem:[%s6151_s6 + $0x278] sm:$0xff]  ;;  %v62_v51 = vld [vmem:[%s6151_s6 + $0xf0] sm:$0xff] }
  0x14   :  { %702 = vmatprep.subr.bf16.mxu0 %v4065_v41  ;;  %v49_v32 = vld [vmem:[%s6151_s6 + $0x88] sm:$0xff]  ;;  %v3996_v41 = vcombine.low %v36_v26, %v48_v29  ;;  %v4073_v44 = vcombine.high %v110_v34, %v122_v37  ;;  %v4075_v46 = vcombine.high %v111_v39, %v123_v40  ;;  %v74_v54 = vld [vmem:[%s6151_s6 + $0x150] sm:$0xff]  ;;  %v124_v4 = vld [vmem:[%s6151_s6 + $0x2e0] sm:$0xff] }
  0x15   :  { %4085 = vmatmul.mubr.msk.bf16.vlgmr.msra.gmra.mxu1 %vm608_vm1, %v5096_v47  ;;  %v3999_v38 = vcombine.high %v37_v31, %v49_v32  ;;  %v3998_v43 = vcombine.low %v37_v31, %v49_v32  ;;  %v38_v59 = vld [vmem:[%s6151_s6 + $0x30] sm:$0xff]  ;;  %v4025_v60 = vcombine.high %v62_v51, %v74_v54  ;;  %v113_v7 = vld [vmem:[%s6151_s6 + $0x288] sm:$0xff]  ;;  %v88_v12 = vld [vmem:[%s6151_s6 + $0x1c0] sm:$0xff] }
  0x16   :  { %4084 = vmatmul.mubr.msk.bf16.vlgmr.msra.gmra.mxu0 %vm608_vm1, %v5096_v47  ;;  %744 = vmatpush1.bf16.msra.mxu1 %v4066_v50  ;;  %v4072_v50 = vcombine.low %v110_v34, %v122_v37  ;;  %v50_v62 = vld [vmem:[%s6151_s6 + $0x90] sm:$0xff]  ;;  %v100_v13 = vld [vmem:[%s6151_s6 + $0x220] sm:$0xff]  ;;  %v89_v16 = vld [vmem:[%s6151_s6 + $0x1c8] sm:$0xff] }
  0x17   :  { %703 = vmatpush1.bf16.msra.mxu0 %v4064_v48  ;;  %745 = vmatprep.subr.bf16.mxu1 %v4043_v53  ;;  %v87_v48 = vld [vmem:[%s6151_s6 + $0x1b8] sm:$0xff]  ;;  %v4074_v53 = vcombine.low %v111_v39, %v123_v40  ;;  %v4001_v5 = vcombine.high %v38_v59, %v50_v62  ;;  %v76_v21 = vld [vmem:[%s6151_s6 + $0x160] sm:$0xff]  ;;  %v65_v24 = vld [vmem:[%s6151_s6 + $0x108] sm:$0xff] }
  0x18   :  { %704 = vmatprep.subr.bf16.mxu0 %v4041_v49  ;;  %726 = vmatprep.mubr.bf16.mxu0 %v4956_v9  ;;  %v99_v49 = vld [vmem:[%s6151_s6 + $0x218] sm:$0xff]  ;;  %v52_v29 = vld [vmem:[%s6151_s6 + $0xa0] sm:$0xff]  ;;  %v41_v32 = vld [vmem:[%s6151_s6 + $0x48] sm:$0xff] }
  0x19   :  { %767 = vmatprep.mubr.bf16.mxu1 %v4956_v9  ;;  %v4051_v55 = vcombine.high %v87_v48, %v99_v49  ;;  %v126_v37 = vld [vmem:[%s6151_s6 + $0x2f0] sm:$0xff]  ;;  %v115_v40 = vld [vmem:[%s6151_s6 + $0x298] sm:$0xff] }
  0x1a   :  { %746 = vmatpush1.bf16.msra.mxu1 %v4042_v58  ;;  %v4048_v58 = vcombine.low %v86_v42, %v98_v45  ;;  %v102_v45 = vld [vmem:[%s6151_s6 + $0x230] sm:$0xff] }
  0x1b   :  { %705 = vmatpush1.bf16.msra.mxu0 %v4040_v56  ;;  %747 = vmatprep.subr.bf16.mxu1 %v4019_v61  ;;  %v63_v56 = vld [vmem:[%s6151_s6 + $0xf8] sm:$0xff]  ;;  %v4050_v61 = vcombine.low %v87_v48, %v99_v49 }
  0x1c   :  { %706 = vmatprep.subr.bf16.mxu0 %v4017_v57  ;;  %v75_v57 = vld [vmem:[%s6151_s6 + $0x158] sm:$0xff] }
  0x1d   :  { %v4027_v63 = vcombine.high %v63_v56, %v75_v57  ;;  %v4026_v6 = vcombine.low %v63_v56, %v75_v57  ;;  %v91_v49 = vld [vmem:[%s6151_s6 + $0x1d8] sm:$0xff] }
  0x1e   :  { %748 = vmatpush1.bf16.msra.mxu1 %v4018_v2  ;;  %v4024_v2 = vcombine.low %v62_v51, %v74_v54 }
  0x1f   :  { %707 = vmatpush1.bf16.msra.mxu0 %v4016_v0  ;;  %749 = vmatprep.subr.bf16.mxu1 %v3995_v3  ;;  %v39_v0 = vld [vmem:[%s6151_s6 + $0x38] sm:$0xff]  ;;  %v112_v3 = vld [vmem:[%s6151_s6 + $0x280] sm:$0xff] }
  0x20   :  { %708 = vmatprep.subr.bf16.mxu0 %v3993_v1  ;;  %v51_v1 = vld [vmem:[%s6151_s6 + $0x98] sm:$0xff]  ;;  %v4077_v15 = vcombine.high %v112_v3, %v124_v4 }
  0x22   :  { %750 = vmatpush1.bf16.msra.mxu1 %v3994_v10  ;;  %v4003_v10 = vcombine.high %v39_v0, %v51_v1 }
  0x23   :  { %709 = vmatpush1.bf16.msra.mxu0 %v3992_v8  ;;  %825 = vmatprep.subr.bf16.mxu1 %v4071_v14  ;;  %v125_v8 = vld [vmem:[%s6151_s6 + $0x2e8] sm:$0xff]  ;;  %v4002_v14 = vcombine.low %v39_v0, %v51_v1 }
  0x24   :  { %784 = vmatprep.subr.bf16.mxu0 %v4069_v11  ;;  %v4000_v11 = vcombine.low %v38_v59, %v50_v62  ;;  %v4079_v18 = vcombine.high %v113_v7, %v125_v8  ;;  %v4078_v23 = vcombine.low %v113_v7, %v125_v8  ;;  %v79_v59 = vld [vmem:[%s6151_s6 + $0x178] sm:$0xff] }
  0x25   :  { %4087 = vmatmul.mubr.msk.bf16.vlgmr.msra.gmra.mxu1 %vm608_vm1, %v5096_v47 }
  0x26   :  { %4086 = vmatmul.mubr.msk.bf16.vlgmr.msra.gmra.mxu0 %vm608_vm1, %v5096_v47  ;;  %826 = vmatpush1.bf16.msra.mxu1 %v4070_v20  ;;  %v64_v20 = vld [vmem:[%s6151_s6 + $0x100] sm:$0xff] }
  0x27   :  { %785 = vmatpush1.bf16.msra.mxu0 %v4068_v17  ;;  %827 = vmatprep.subr.bf16.mxu1 %v4047_v22  ;;  %v101_v17 = vld [vmem:[%s6151_s6 + $0x228] sm:$0xff]  ;;  %v4053_v22 = vcombine.high %v88_v12, %v100_v13 }
  0x28   :  { %786 = vmatprep.subr.bf16.mxu0 %v4045_v19  ;;  %808 = vmatprep.mubr.bf16.mxu0 %v4956_v9  ;;  %v4076_v19 = vcombine.low %v112_v3, %v124_v4  ;;  %v4055_v26 = vcombine.high %v89_v16, %v101_v17  ;;  %v4054_v31 = vcombine.low %v89_v16, %v101_v17  ;;  %v55_v3 = vld [vmem:[%s6151_s6 + $0xb8] sm:$0xff]  ;;  %v4699_v16 = vld [vmem:[%s6152_s7 + $0x30] sm:$0xff]  }
  0x29   :  { %849 = vmatprep.mubr.bf16.mxu1 %v4956_v9  ;;  %v4701_v17 = vld [vmem:[%s6152_s7 + $0xb0] sm:$0xff]  }
  0x2a   :  { %828 = vmatpush1.bf16.msra.mxu1 %v4046_v28  ;;  %v40_v28 = vld [vmem:[%s6151_s6 + $0x40] sm:$0xff] }
  0x2b   :  { %787 = vmatpush1.bf16.msra.mxu0 %v4044_v25  ;;  %829 = vmatprep.subr.bf16.mxu1 %v4023_v30  ;;  %v77_v25 = vld [vmem:[%s6151_s6 + $0x168] sm:$0xff]  ;;  %v4029_v30 = vcombine.high %v64_v20, %v76_v21 }
  0x2c   :  { %788 = vmatprep.subr.bf16.mxu0 %v4021_v27  ;;  %v4052_v27 = vcombine.low %v88_v12, %v100_v13  ;;  %v4031_v34 = vcombine.high %v65_v24, %v77_v25  ;;  %v4030_v39 = vcombine.low %v65_v24, %v77_v25  ;;  %v4695_v12 = vld [vmem:[%s6152_s7 + $0x38] sm:$0xff]   ;;  %v4709_v24 = vld [vmem:[%s6152_s7 + $0xa0] sm:$0xff]  }
  0x2d   :  { %v4697_v13 = vld [vmem:[%s6152_s7 + $0xb8] sm:$0xff]  }
  0x2e   :  { %830 = vmatpush1.bf16.msra.mxu1 %v4022_v36  ;;  %v114_v36 = vld [vmem:[%s6151_s6 + $0x290] sm:$0xff]  ;;  %v4710_v25 = vld [vmem:[%s6152_s7 + $0x58] sm:$0xff]  }
  0x2f   :  { %789 = vmatpush1.bf16.msra.mxu0 %v4020_v33  ;;  %831 = vmatprep.subr.bf16.mxu1 %v3999_v38  ;;  %v53_v33 = vld [vmem:[%s6151_s6 + $0xa8] sm:$0xff]  ;;  %v4005_v38 = vcombine.high %v40_v28, %v52_v29  ;;  %v4081_v48 = vcombine.high %v114_v36, %v126_v37 }
  0x30   :  { %790 = vmatprep.subr.bf16.mxu0 %v3997_v35  ;;  %v4028_v35 = vcombine.low %v64_v20, %v76_v21  ;;  %v4007_v42 = vcombine.high %v41_v32, %v53_v33  ;;  %v4705_v20 = vld [vmem:[%s6152_s7 + $0xa8] sm:$0xff]   ;;  %v4706_v21 = vld [vmem:[%s6152_s7 + $0x60] sm:$0xff]  }
  0x32   :  { %832 = vmatpush1.bf16.msra.mxu1 %v3998_v43  ;;  %v4004_v43 = vcombine.low %v40_v28, %v52_v29  ;;  %v4713_v28 = vld [vmem:[%s6152_s7 + $0x98] sm:$0xff]   ;;  %v4714_v29 = vld [vmem:[%s6152_s7 + $0x50] sm:$0xff]  }
  0x33   :  { %791 = vmatpush1.bf16.msra.mxu0 %v3996_v41  ;;  %907 = vmatprep.subr.bf16.mxu1 %v4075_v46  ;;  %v127_v41 = vld [vmem:[%s6151_s6 + $0x2f8] sm:$0xff]  ;;  %v4006_v46 = vcombine.low %v41_v32, %v53_v33  ;;  %v4717_v32 = vld [vmem:[%s6152_s7 + $0x90] sm:$0xff]   ;;  %v4718_v33 = vld [vmem:[%s6152_s7 + $0x48] sm:$0xff]  }
  0x34   :  { %866 = vmatprep.subr.bf16.mxu0 %v4073_v44  ;;  %v90_v44 = vld [vmem:[%s6151_s6 + $0x1d0] sm:$0xff]  ;;  %v4083_v51 = vcombine.high %v115_v40, %v127_v41  ;;  %v4082_v56 = vcombine.low %v115_v40, %v127_v41  ;;  %v4725_v40 = vld [vmem:[%s6152_s7 + $0x80] sm:$0xff]   ;;  %v4726_v41 = vld [vmem:[%s6152_s7 + $0x178] sm:$0xff]  }
  0x35   :  { %4089 = vmatmul.mubr.msk.bf16.vlgmr.msra.gmra.mxu1 %vm608_vm1, %v5096_v47  ;;  %v4057_v54 = vcombine.high %v90_v44, %v102_v45 }
  0x36   :  { %4088 = vmatmul.mubr.msk.bf16.vlgmr.msra.gmra.mxu0 %vm608_vm1, %v5096_v47  ;;  %908 = vmatpush1.bf16.msra.mxu1 %v4074_v53  ;;  %v66_v53 = vld [vmem:[%s6151_s6 + $0x110] sm:$0xff] }
  0x37   :  { %867 = vmatpush1.bf16.msra.mxu0 %v4072_v50  ;;  %909 = vmatprep.subr.bf16.mxu1 %v4051_v55  ;;  %v103_v50 = vld [vmem:[%s6151_s6 + $0x238] sm:$0xff]  ;;  %v78_v55 = vld [vmem:[%s6151_s6 + $0x170] sm:$0xff] }
  0x38   :  { %868 = vmatprep.subr.bf16.mxu0 %v4049_v52  ;;  %890 = vmatprep.mubr.bf16.mxu0 %v4956_v9  ;;  %v4080_v52 = vcombine.low %v114_v36, %v126_v37  ;;  %v4059_v57 = vcombine.high %v91_v49, %v103_v50  ;;  %v4033_v62 = vcombine.high %v66_v53, %v78_v55  ;;  %v4721_v36 = vld [vmem:[%s6152_s7 + $0x88] sm:$0xff]   ;;  %v4722_v37 = vld [vmem:[%s6152_s7 + $0x40] sm:$0xff]  }
  0x39   :  { %931 = vmatprep.mubr.bf16.mxu1 %v4956_v9  ;;  %v4058_v0 = vcombine.low %v91_v49, %v103_v50  ;;  %v4032_v4 = vcombine.low %v66_v53, %v78_v55 }
  0x3a   :  { %910 = vmatpush1.bf16.msra.mxu1 %v4050_v61  ;;  %v42_v61 = vld [vmem:[%s6151_s6 + $0x50] sm:$0xff] }
  0x3b   :  { %869 = vmatpush1.bf16.msra.mxu0 %v4048_v58  ;;  %911 = vmatprep.subr.bf16.mxu1 %v4027_v63  ;;  %v67_v58 = vld [vmem:[%s6151_s6 + $0x118] sm:$0xff]  ;;  %v54_v63 = vld [vmem:[%s6151_s6 + $0xb0] sm:$0xff] }
  0x3c   :  { %870 = vmatprep.subr.bf16.mxu0 %v4025_v60  ;;  %v4056_v60 = vcombine.low %v90_v44, %v102_v45  ;;  %v4035_v1 = vcombine.high %v67_v58, %v79_v59  ;;  %v4008_v8 = vcombine.low %v42_v61, %v54_v63  ;;  %v4932_v45 = vld [vmem:[%s6145_s0] sm:$0xff] }
  0x3e   :  { %912 = vmatpush1.bf16.msra.mxu1 %v4026_v6  ;;  %v4034_v6 = vcombine.low %v67_v58, %v79_v59 }
  0x3f   :  { %871 = vmatpush1.bf16.msra.mxu0 %v4024_v2  ;;  %913 = vmatprep.subr.bf16.mxu1 %v4003_v10  ;;  %v43_v2 = vld [vmem:[%s6151_s6 + $0x58] sm:$0xff] }
  0x40   :  { %872 = vmatprep.subr.bf16.mxu0 %v4001_v5  ;;  %v4009_v5 = vcombine.high %v42_v61, %v54_v63  ;;  %v4011_v7 = vcombine.high %v43_v2, %v55_v3  ;;  %v4010_v10 = vcombine.low %v43_v2, %v55_v3  ;;  %v4727_v3 = vld [vmem:[%s6152_s7 + $0x138] sm:$0xff]  }
  0x42   :  { %914 = vmatpush1.bf16.msra.mxu1 %v4002_v14  ;;  %v4698_v14 = vld [vmem:[%s6152_s7 + $0x70] sm:$0xff]  }
  0x43   :  { %873 = vmatpush1.bf16.msra.mxu0 %v4000_v11  ;;  %989 = vmatprep.subr.bf16.mxu1 %v4079_v18  ;;  %v4694_v11 = vld [vmem:[%s6152_s7 + $0x78] sm:$0xff]   ;;  %v4702_v18 = vld [vmem:[%s6152_s7 + $0x68] sm:$0xff]  }
  0x44   :  { %948 = vmatprep.subr.bf16.mxu0 %v4077_v15  ;;  %v4700_v15 = vld [vmem:[%s6152_s7 + $0xf0] sm:$0xff]  }
  0x45   :  { %4091 = vmatmul.mubr.msk.bf16.vlgmr.msra.gmra.mxu1 %vm608_vm1, %v5096_v47 }
  0x46   :  { %4090 = vmatmul.mubr.msk.bf16.vlgmr.msra.gmra.mxu0 %vm608_vm1, %v5096_v47  ;;  %990 = vmatpush1.bf16.msra.mxu1 %v4078_v23  ;;  %v4707_v23 = vld [vmem:[%s6152_s7 + $0x20] sm:$0xff]  }
  0x47   :  { %949 = vmatpush1.bf16.msra.mxu0 %v4076_v19  ;;  %991 = vmatprep.subr.bf16.mxu1 %v4055_v26  ;;  %v4704_v19 = vld [vmem:[%s6152_s7 + $0xe8] sm:$0xff]   ;;  %v4712_v26 = vld [vmem:[%s6152_s7 + $0xd8] sm:$0xff]  }
  0x48   :  { %950 = vmatprep.subr.bf16.mxu0 %v4053_v22  ;;  %972 = vmatprep.mubr.bf16.mxu0 %v4956_v9  ;;  %v4708_v22 = vld [vmem:[%s6152_s7 + $0xe0] sm:$0xff]  }
  0x49   :  { %1013 = vmatprep.mubr.bf16.mxu1 %v4956_v9 }
  0x4a   :  { %992 = vmatpush1.bf16.msra.mxu1 %v4054_v31  ;;  %v4715_v31 = vld [vmem:[%s6152_s7 + $0x10] sm:$0xff]  }
  0x4b   :  { %951 = vmatpush1.bf16.msra.mxu0 %v4052_v27  ;;  %993 = vmatprep.subr.bf16.mxu1 %v4031_v34  ;;  %v4711_v27 = vld [vmem:[%s6152_s7 + $0x18] sm:$0xff]   ;;  %v4720_v34 = vld [vmem:[%s6152_s7 + $0xc8] sm:$0xff]  }
  0x4c   :  { %952 = vmatprep.subr.bf16.mxu0 %v4029_v30  ;;  %v4716_v30 = vld [vmem:[%s6152_s7 + $0xd0] sm:$0xff]  }
  0x4e   :  { %994 = vmatpush1.bf16.msra.mxu1 %v4030_v39  ;;  %v4723_v39 = vld [vmem:[%s6152_s7] sm:$0xff]  }
  0x4f   :  { %953 = vmatpush1.bf16.msra.mxu0 %v4028_v35  ;;  %995 = vmatprep.subr.bf16.mxu1 %v4007_v42  ;;  %v4719_v35 = vld [vmem:[%s6152_s7 + $0x8] sm:$0xff]   ;;  %v4728_v42 = vld [vmem:[%s6152_s7 + $0x1f8] sm:$0xff]  }
  0x50   :  { %954 = vmatprep.subr.bf16.mxu0 %v4005_v38  ;;  %v4724_v38 = vld [vmem:[%s6152_s7 + $0xc0] sm:$0xff]  }
  0x52   :  { %996 = vmatpush1.bf16.msra.mxu1 %v4006_v46 }
  0x53   :  { %955 = vmatpush1.bf16.msra.mxu0 %v4004_v43  ;;  %1071 = vmatprep.subr.bf16.mxu1 %v4083_v51  ;;  %v4933_v51 = vld [vmem:[%s6145_s0 + $0x8] sm:$0xff] }
  0x54   :  { %1030 = vmatprep.subr.bf16.mxu0 %v4081_v48 }
  0x55   :  { %4093 = vmatmul.mubr.msk.bf16.vlgmr.msra.gmra.mxu1 %vm608_vm1, %v5096_v47 }
  0x56   :  { %4092 = vmatmul.mubr.msk.bf16.vlgmr.msra.gmra.mxu0 %vm608_vm1, %v5096_v47  ;;  %1072 = vmatpush1.bf16.msra.mxu1 %v4082_v56 }
  0x57   :  { %1031 = vmatpush1.bf16.msra.mxu0 %v4080_v52  ;;  %1073 = vmatprep.subr.bf16.mxu1 %v4059_v57 }
  0x58   :  { %1032 = vmatprep.subr.bf16.mxu0 %v4057_v54  ;;  %1054 = vmatprep.mubr.bf16.mxu0 %v4956_v9 }
  0x59   :  { %1095 = vmatprep.mubr.bf16.mxu1 %v4956_v9  ;;  %v4696_v9 = vld [vmem:[%s6152_s7 + $0xf8] sm:$0xff]  }
  0x5a   :  { %1074 = vmatpush1.bf16.msra.mxu1 %v4058_v0 }
  0x5b   :  { %1033 = vmatpush1.bf16.msra.mxu0 %v4056_v60  ;;  %1075 = vmatprep.subr.bf16.mxu1 %v4035_v1 }
  0x5c   :  { %1034 = vmatprep.subr.bf16.mxu0 %v4033_v62 }
  0x5e   :  { %1076 = vmatpush1.bf16.msra.mxu1 %v4034_v6 }
  0x5f   :  { %1035 = vmatpush1.bf16.msra.mxu0 %v4032_v4  ;;  %1077 = vmatprep.subr.bf16.mxu1 %v4011_v7 }
  0x60   :  { %1036 = vmatprep.subr.bf16.mxu0 %v4009_v5 }
  0x62   :  { %1078 = vmatpush1.bf16.msra.mxu1 %v4010_v10  ;;  %v4730_v10 = vld [vmem:[%s6152_s7 + $0x170] sm:$0xff]  }
  0x63   :  { %1037 = vmatpush1.bf16.msra.mxu0 %v4008_v8  ;;  %4344 = vmatprep.subr.bf16.mxu1 %v4696_v9  ;;  %v4729_v8 = vld [vmem:[%s6152_s7 + $0x1b8] sm:$0xff]  }
  0x64   :  { %4322 = vmatprep.subr.bf16.mxu0 %v4694_v11  ;;  %v4732_v11 = vld [vmem:[%s6152_s7 + $0x1f0] sm:$0xff]  }
  0x65   :  { %4095 = vmatmul.mubr.msk.bf16.vlgmr.msra.gmra.mxu1 %vm608_vm1, %v5096_v47 }
  0x66   :  { %4094 = vmatmul.mubr.msk.bf16.vlgmr.msra.gmra.mxu0 %vm608_vm1, %v5096_v47  ;;  %4345 = vmatpush3.bf16.msra.mxu1 %v4697_v13  ;;  %v4703_v47 = vld [vmem:[%s6152_s7 + $0x28] sm:$0xff]   ;;  %v4733_v13 = vld [vmem:[%s6152_s7 + $0x1b0] sm:$0xff]  }
  0x67   :  { %4323 = vmatpush3.bf16.msra.mxu0 %v4695_v12  ;;  %4346 = vmatprep.subr.bf16.mxu1 %v4700_v15  ;;  %v4731_v12 = vld [vmem:[%s6152_s7 + $0x130] sm:$0xff]   ;;  %v4736_v15 = vld [vmem:[%s6152_s7 + $0x1e8] sm:$0xff]  }
  0x68   :  { %4324 = vmatprep.subr.bf16.mxu0 %v4698_v14  ;;  %v4734_v14 = vld [vmem:[%s6152_s7 + $0x168] sm:$0xff]  }
  0x6a   :  { %4347 = vmatpush3.bf16.msra.mxu1 %v4701_v17  ;;  %v4737_v17 = vld [vmem:[%s6152_s7 + $0x1a8] sm:$0xff]  }
  0x6b   :  { %4325 = vmatpush3.bf16.msra.mxu0 %v4699_v16  ;;  %4348 = vmatprep.subr.bf16.mxu1 %v4704_v19  ;;  %v4735_v16 = vld [vmem:[%s6152_s7 + $0x128] sm:$0xff]   ;;  %v4740_v19 = vld [vmem:[%s6152_s7 + $0x1e0] sm:$0xff]  }
  0x6c   :  { %4326 = vmatprep.subr.bf16.mxu0 %v4702_v18  ;;  %v4738_v18 = vld [vmem:[%s6152_s7 + $0x160] sm:$0xff]  }
  0x6e   :  { %4349 = vmatpush3.bf16.msra.mxu1 %v4705_v20 }
  0x6f   :  { %4327 = vmatpush3.bf16.msra.mxu0 %v4703_v47  ;;  %4350 = vmatprep.subr.bf16.mxu1 %v4708_v22 }
  0x70   :  { %4328 = vmatprep.subr.bf16.mxu0 %v4706_v21 }
  0x72   :  { %4351 = vmatpush3.bf16.msra.mxu1 %v4709_v24 }
  0x73   :  { %4329 = vmatpush3.bf16.msra.mxu0 %v4707_v23  ;;  %4352 = vmatprep.subr.bf16.mxu1 %v4712_v26 }
  0x74   :  { %4330 = vmatprep.subr.bf16.mxu0 %v4710_v25 }
  0x76   :  { %4353 = vmatpush3.bf16.msra.mxu1 %v4713_v28 }
  0x77   :  { %4331 = vmatpush3.bf16.msra.mxu0 %v4711_v27  ;;  %4354 = vmatprep.subr.bf16.mxu1 %v4716_v30 }
  0x78   :  { %4332 = vmatprep.subr.bf16.mxu0 %v4714_v29 }
  0x7a   :  { %4355 = vmatpush3.bf16.msra.mxu1 %v4717_v32 }
  0x7b   :  { %4333 = vmatpush3.bf16.msra.mxu0 %v4715_v31  ;;  %4356 = vmatprep.subr.bf16.mxu1 %v4720_v34 }
  0x7c   :  { %4334 = vmatprep.subr.bf16.mxu0 %v4718_v33 }
  0x7e   :  { %4357 = vmatpush3.bf16.msra.mxu1 %v4721_v36 }
  0x7f   :  { %4335 = vmatpush3.bf16.msra.mxu0 %v4719_v35  ;;  %4358 = vmatprep.subr.bf16.mxu1 %v4724_v38 }
  0x80   :  { %4336 = vmatprep.subr.bf16.mxu0 %v4722_v37 }
  0x82   :  { %4359 = vmatpush3.bf16.msra.mxu1 %v4725_v40 }
  0x83   :  { %4337 = vmatpush3.bf16.msra.mxu0 %v4723_v39  ;;  %4388 = vmatprep.subr.bf16.mxu1 %v4728_v42 }
  0x84   :  { %4366 = vmatprep.subr.bf16.mxu0 %v4726_v41 }
  0x8c   :  { %v3180_v43 = vpop.xlane.xlu0 %3179 }
  0x8d   :  { %v3185_v44 = vmul.f32 0.03125, %v3180_v43 }
  0x8f   :  { %v5453_v46 = vsub.f32 %v4932_v45, %v3185_v44 }
  0x90   :  { %v3183_v48 = vpop.xlane.xlu0 %3182 }
  0x91   :  { %v3186_v49 = vmul.f32 0.03125, %v3183_v48  ;;  %v3189_v50 = vmul.f32 %v5453_v46, %v5453_v46 }
  0x93   :  { %v5460_v52 = vsub.f32 %v4933_v51, %v3186_v49  ;;  %v3191_v53 = vsel %vm3177_vm0, %v3189_v50, 0.0 }
  0x94   :  { %3192 = vadd.xlane.f32.xlu1 %v3191_v53 }
  0x95   :  { %v3190_v54 = vmul.f32 %v5460_v52, %v5460_v52 }
  0x97   :  { %v3194_v55 = vsel %vm3177_vm0, %v3190_v54, 0.0 }
  0x98   :  { %3195 = vadd.xlane.f32.xlu1 %v3194_v55 }
  0xd5   :  { %v687_v57 = vpop.f32.mrf.mxu1 }
  0xd6   :  { %v646_v56 = vpop.f32.mrf.mxu0  ;;  %v1106_v60 = vmax.f32 %v687_v57, 0.0 }
  0xd7   :  { %v1104_v58 = vmax.f32 %v646_v56, 0.0  ;;  %v689_v62 = vpop.f32.mrf.mxu1 }
  0xd8   :  { %v648_v59 = vpop.f32.mrf.mxu0  ;;  %v1107_v0 = vmax.f32 %v689_v62, 0.0  ;;  %v1130_v2 = vpack.c.bf16 %v1106_v60, %v1106_v60 }
  0xd9   :  { %v1105_v61 = vmax.f32 %v648_v59, 0.0  ;;  %v691_v4 = vpop.f32.mrf.mxu1  ;;  %v1128_v5 = vpack.c.bf16 %v1104_v58, %v1104_v58 }
  0xda   :  { %v650_v63 = vpop.f32.mrf.mxu0  ;;  %v1131_v6 = vpack.c.bf16 %v1107_v0, %v1107_v0 }
  0xdb   :  { %v1129_v1 = vpack.c.bf16 %v1105_v61, %v1105_v61  ;;  %v692_v9 = vpop.f32.mrf.mxu1 }
  0xdc   :  { %v651_v7 = vpop.f32.mrf.mxu0  ;;  %2765 = vmatprep.mubr.bf16.mxu1 %v1131_v6 }
  0xdd   :  { %2725 = vmatprep.mubr.bf16.mxu0 %v1129_v1  ;;  %2766 = vmatmul.mubr.bf16.vlgmr.msra.gmra.mxu1 %v1130_v2 }
  0xde   :  { %2726 = vmatmul.mubr.bf16.vlgmr.msra.gmra.mxu0 %v1128_v5  ;;  %4389 = vmatpush3.bf16.msra.mxu1 %v4729_v8 }
  0xdf   :  { %4367 = vmatpush3.bf16.msra.mxu0 %v4727_v3  ;;  %4390 = vmatprep.subr.bf16.mxu1 %v4732_v11 }
  0xe0   :  { %4368 = vmatprep.subr.bf16.mxu0 %v4730_v10 }
  0xe2   :  { %4391 = vmatpush3.bf16.msra.mxu1 %v4733_v13 }
  0xe3   :  { %4369 = vmatpush3.bf16.msra.mxu0 %v4731_v12  ;;  %4392 = vmatprep.subr.bf16.mxu1 %v4736_v15 }
  0xe4   :  { %4370 = vmatprep.subr.bf16.mxu0 %v4734_v14 }
  0xe6   :  { %v5502_v47 = vpop.f32.mrf.mxu0 }
  0xe7   :  { %13 = vsyncpa [#allocation3], 0  ;;  %4371 = vmatpush3.bf16.msra.mxu0 %v4735_v16  ;;  %v4739_v20 = vld [vmem:[%s6152_s7 + $0x120] sm:$0xff]   ;;  %v769_v21 = vpop.f32.mrf.mxu1  ;;  %4393 = vmatpush3.bf16.msra.mxu1 %v4737_v17  ;;  %v4742_v23 = vld [vmem:[%s6152_s7 + $0x158] sm:$0xff]   ;;  %v1108_v54 = vmax.f32 %v5502_v47, 0.0  ;;  %vm4958_vm2 = vmmov 0  }
  0xe8   :  { %4372 = vmatprep.subr.bf16.mxu0 %v4738_v18  ;;  %v4741_v22 = vld [vmem:[%s6152_s7 + $0x1a0] sm:$0xff]   ;;  %v730_v24 = vpop.f32.mrf.mxu0  ;;  %4394 = vmatprep.subr.bf16.mxu1 %v4740_v19  ;;  %v4744_v25 = vld [vmem:[%s6152_s7 + $0x1d8] sm:$0xff]   ;;  %v4746_v34 = vld [vmem:[%s6152_s7 + $0x150] sm:$0xff]   ;;  %v1110_v50 = vmax.f32 %v769_v21, 0.0  ;;  %s4959_s21 = smov 80   ;;  %s4960_s6 = smov 96  }
  0xe9   :  { %v1109_v26 = vmax.f32 %v730_v24, 0.0  ;;  %v771_v27 = vpop.f32.mrf.mxu1  ;;  %v4743_v30 = vld [vmem:[%s6152_s7 + $0x118] sm:$0xff]   ;;  %v4748_v37 = vld [vmem:[%s6152_s7 + $0x1d0] sm:$0xff]   ;;  %v4750_v41 = vld [vmem:[%s6152_s7 + $0x148] sm:$0xff]   ;;  %v1132_v2 = vpack.c.bf16 %v1108_v54, %v1108_v54  ;;  %s4961_s22 = smov 112   ;;  %vm3305_vm3 = vcmask 130048  }
  0xea   :  { %v732_v28 = vpop.f32.mrf.mxu0  ;;  %v1111_v29 = vmax.f32 %v771_v27, 0.0  ;;  %v4745_v33 = vld [vmem:[%s6152_s7 + $0x198] sm:$0xff]   ;;  %v4747_v39 = vld [vmem:[%s6152_s7 + $0x110] sm:$0xff]   ;;  %v4752_v42 = vld [vmem:[%s6152_s7 + $0x1c8] sm:$0xff]   ;;  %v1134_v63 = vpack.c.bf16 %v1110_v50, %v1110_v50  ;;  %s4963_s27 = smov 48   ;;  %vm3907_vm4 = vcmask 1041409  }
  0xeb   :  { %4373 = vmatpush3.bf16.msra.mxu0 %v4739_v20  ;;  %v1133_v31 = vpack.c.bf16 %v1109_v26, %v1109_v26  ;;  %v773_v32 = vpop.f32.mrf.mxu1  ;;  %4395 = vmatpush3.bf16.msra.mxu1 %v4741_v22  ;;  %v4749_v40 = vld [vmem:[%s6152_s7 + $0x190] sm:$0xff]   ;;  %v4751_v43 = vld [vmem:[%s6152_s7 + $0x108] sm:$0xff]   ;;  %v4754_v45 = vld [vmem:[%s6152_s7 + $0x140] sm:$0xff]   ;;  %s4965_s14 = smov [#allocation2]   ;;  %vm3966_vm5 = vcmask 254976   ;;  %vm3972_vm6 = vcmask 517376  }
  0xec   :  { %4374 = vmatprep.subr.bf16.mxu0 %v4742_v23  ;;  %v733_v35 = vpop.f32.mrf.mxu0  ;;  %v1135_v36 = vpack.c.bf16 %v1111_v29, %v1111_v29  ;;  %4396 = vmatprep.subr.bf16.mxu1 %v4744_v25  ;;  %v4753_v44 = vld [vmem:[%s6152_s7 + $0x188] sm:$0xff]   ;;  %v4756_v48 = vld [vmem:[%s6152_s7 + $0x1c0] sm:$0xff]   ;;  %v4758_v56 = vld [vmem:[%s6152_s7 + $0x278] sm:$0xff]   ;;  %s3980_s15 = sshll.u32 %s4965_s14, 4  ;;  %s3981_s15 = int_to_ptr.vmem [resolvable:$true] %s3980_s15 }
  0xed   :  { %2805 = vmatprep.mubr.bf16.mxu0 %v1133_v31  ;;  %v774_v38 = vpop.f32.mrf.mxu1  ;;  %v4755_v51 = vld [vmem:[%s6152_s7 + $0x100] sm:$0xff]   ;;  %v4760_v58 = vld [vmem:[%s6152_s7 + $0x2f8] sm:$0xff]   ;;  %v4762_v4 = vld [vmem:[%s6152_s7 + $0x270] sm:$0xff]   ;;  %p4939_p1 = scmp.lt.s32.totalorder %s3981_s15, %s3981_s15 }
  0xee   :  { %2845 = vmatprep.mubr.bf16.mxu1 %v1135_v36  ;;  %v4757_v55 = vld [vmem:[%s6152_s7 + $0x180] sm:$0xff]   ;;  %v4759_v0 = vld [vmem:[%s6152_s7 + $0x238] sm:$0xff]   ;;  %v4764_v6 = vld [vmem:[%s6152_s7 + $0x2f0] sm:$0xff]  }
  0xef   :  { %4375 = vmatpush3.bf16.msra.mxu0 %v4743_v30  ;;  %4397 = vmatpush3.bf16.msra.mxu1 %v4745_v33  ;;  %v4761_v3 = vld [vmem:[%s6152_s7 + $0x2b8] sm:$0xff]   ;;  %v4763_v11 = vld [vmem:[%s6152_s7 + $0x230] sm:$0xff]   ;;  %v4766_v12 = vld [vmem:[%s6152_s7 + $0x268] sm:$0xff]  }
  0xf0   :  { %4376 = vmatprep.subr.bf16.mxu0 %v4746_v34  ;;  %4398 = vmatprep.subr.bf16.mxu1 %v4748_v37  ;;  %v4765_v9 = vld [vmem:[%s6152_s7 + $0x2b0] sm:$0xff]   ;;  %v4768_v13 = vld [vmem:[%s6152_s7 + $0x2e8] sm:$0xff]   ;;  %v4770_v16 = vld [vmem:[%s6152_s7 + $0x260] sm:$0xff]  }
  0xf1   :  { %v4767_v14 = vld [vmem:[%s6152_s7 + $0x228] sm:$0xff]   ;;  %v4772_v17 = vld [vmem:[%s6152_s7 + $0x2e0] sm:$0xff]   ;;  %v4774_v21 = vld [vmem:[%s6152_s7 + $0x258] sm:$0xff]  }
  0xf2   :  { %v4769_v15 = vld [vmem:[%s6152_s7 + $0x2a8] sm:$0xff]   ;;  %v4771_v19 = vld [vmem:[%s6152_s7 + $0x220] sm:$0xff]   ;;  %v4776_v23 = vld [vmem:[%s6152_s7 + $0x2d8] sm:$0xff]  }
  0xf3   :  { %4377 = vmatpush3.bf16.msra.mxu0 %v4747_v39  ;;  %4399 = vmatpush3.bf16.msra.mxu1 %v4749_v40  ;;  %v4773_v20 = vld [vmem:[%s6152_s7 + $0x2a0] sm:$0xff]   ;;  %v4775_v26 = vld [vmem:[%s6152_s7 + $0x218] sm:$0xff]   ;;  %v4778_v29 = vld [vmem:[%s6152_s7 + $0x250] sm:$0xff]  }
  0xf4   :  { %4378 = vmatprep.subr.bf16.mxu0 %v4750_v41  ;;  %4400 = vmatprep.subr.bf16.mxu1 %v4752_v42  ;;  %v4777_v28 = vld [vmem:[%s6152_s7 + $0x298] sm:$0xff]   ;;  %v4780_v31 = vld [vmem:[%s6152_s7 + $0x2d0] sm:$0xff]   ;;  %v4782_v35 = vld [vmem:[%s6152_s7 + $0x248] sm:$0xff]  }
  0xf5   :  { %v5557_v53 = vpop.f32.mrf.mxu1  ;;  %v4779_v33 = vld [vmem:[%s6152_s7 + $0x210] sm:$0xff]   ;;  %v4784_v36 = vld [vmem:[%s6152_s7 + $0x2c8] sm:$0xff]   ;;  %v4786_v39 = vld [vmem:[%s6152_s7 + $0x240] sm:$0xff]  }
  0xf6   :  { %v5552_v49 = vpop.f32.mrf.mxu0  ;;  %v4781_v34 = vld [vmem:[%s6152_s7 + $0x290] sm:$0xff]   ;;  %v4783_v37 = vld [vmem:[%s6152_s7 + $0x208] sm:$0xff]   ;;  %v4788_v40 = vld [vmem:[%s6152_s7 + $0x2c0] sm:$0xff]   ;;  %v1114_v42 = vmax.f32 %v5557_v53, 0.0 }
  0xf7   :  { %4379 = vmatpush3.bf16.msra.mxu0 %v4751_v43  ;;  %4401 = vmatpush3.bf16.msra.mxu1 %v4753_v44  ;;  %v853_v60 = vpop.f32.mrf.mxu1  ;;  %v4785_v38 = vld [vmem:[%s6152_s7 + $0x288] sm:$0xff]   ;;  %v4787_v43 = vld [vmem:[%s6152_s7 + $0x200] sm:$0xff]   ;;  %v4790_v50 = vld [vmem:[%s6152_s7 + $0x378] sm:$0xff]  }
  0xf8   :  { %4380 = vmatprep.subr.bf16.mxu0 %v4754_v45  ;;  %v812_v57 = vpop.f32.mrf.mxu0  ;;  %4402 = vmatprep.subr.bf16.mxu1 %v4756_v48  ;;  %v1115_v62 = vmax.f32 %v853_v60, 0.0  ;;  %v1112_v45 = vmax.f32 %v5552_v49, 0.0  ;;  %v4789_v48 = vld [vmem:[%s6152_s7 + $0x280] sm:$0xff]   ;;  %v4792_v53 = vld [vmem:[%s6152_s7 + $0x3f8] sm:$0xff]  }
  0xf9   :  { %v1113_v59 = vmax.f32 %v812_v57, 0.0  ;;  %v855_v1 = vpop.f32.mrf.mxu1  ;;  %v1138_v57 = vpack.c.bf16 %v1114_v42, %v1114_v42  ;;  %v4822_v42 = vld [vmem:[%s6152_s7 + $0x478] sm:$0xff]  }
  0xfa   :  { %v814_v61 = vpop.f32.mrf.mxu0  ;;  %v1139_v10 = vpack.c.bf16 %v1115_v62, %v1115_v62  ;;  %v1136_v60 = vpack.c.bf16 %v1112_v45, %v1112_v45  ;;  %v4794_v62 = vld [vmem:[%s6152_s7 + $0x370] sm:$0xff]  }
  0xfb   :  { %4381 = vmatpush3.bf16.msra.mxu0 %v4755_v51  ;;  %4403 = vmatpush3.bf16.msra.mxu1 %v4757_v55  ;;  %v1137_v7 = vpack.c.bf16 %v1113_v59, %v1113_v59  ;;  %v856_v8 = vpop.f32.mrf.mxu1  ;;  %v4793_v61 = vld [vmem:[%s6152_s7 + $0x3b8] sm:$0xff]  }
  0xfc   :  { %4410 = vmatprep.subr.bf16.mxu0 %v4758_v56  ;;  %v815_v5 = vpop.f32.mrf.mxu0  ;;  %4432 = vmatprep.subr.bf16.mxu1 %v4760_v58  ;;  %v4791_v58 = vld [vmem:[%s6152_s7 + $0x338] sm:$0xff]   ;;  %v4799_v8 = vld [vmem:[%s6152_s7 + $0x328] sm:$0xff]  }
  0xfd   :  { %v4797_v5 = vld [vmem:[%s6152_s7 + $0x3b0] sm:$0xff]  }
  0xfe   :  { %2806 = vmatmul.mubr.bf16.vlgmr.msra.gmra.mxu0 %v1132_v2  ;;  %2846 = vmatmul.mubr.bf16.vlgmr.msra.gmra.mxu1 %v1134_v63 }
  0xff   :  { %4411 = vmatpush3.bf16.msra.mxu0 %v4759_v0  ;;  %4433 = vmatpush3.bf16.msra.mxu1 %v4761_v3  ;;  %v4796_v0 = vld [vmem:[%s6152_s7 + $0x3f0] sm:$0xff]  }
 0x100   :  { %4412 = vmatprep.subr.bf16.mxu0 %v4762_v4  ;;  %4434 = vmatprep.subr.bf16.mxu1 %v4764_v6  ;;  %v4795_v4 = vld [vmem:[%s6152_s7 + $0x330] sm:$0xff]   ;;  %v4798_v6 = vld [vmem:[%s6152_s7 + $0x368] sm:$0xff]  }
 0x101   :  { %2885 = vmatprep.mubr.bf16.mxu0 %v1137_v7  ;;  %2925 = vmatprep.mubr.bf16.mxu1 %v1139_v10  ;;  %v4800_v7 = vld [vmem:[%s6152_s7 + $0x3e8] sm:$0xff]  }
 0x102   :  { %v4801_v10 = vld [vmem:[%s6152_s7 + $0x3a8] sm:$0xff]  }
 0x103   :  { %4413 = vmatpush3.bf16.msra.mxu0 %v4763_v11  ;;  %4435 = vmatpush3.bf16.msra.mxu1 %v4765_v9  ;;  %v4802_v11 = vld [vmem:[%s6152_s7 + $0x360] sm:$0xff]  }
 0x104   :  { %4414 = vmatprep.subr.bf16.mxu0 %v4766_v12  ;;  %4436 = vmatprep.subr.bf16.mxu1 %v4768_v13  ;;  %v4804_v9 = vld [vmem:[%s6152_s7 + $0x3e0] sm:$0xff]  }
 0x105   :  { %v5610_v47 = vpop.f32.mrf.mxu1  ;;  %v4803_v13 = vld [vmem:[%s6152_s7 + $0x320] sm:$0xff]  }
 0x106   :  { %v5605_v18 = vpop.f32.mrf.mxu0 }
 0x107   :  { %4415 = vmatpush3.bf16.msra.mxu0 %v4767_v14  ;;  %4437 = vmatpush3.bf16.msra.mxu1 %v4769_v15  ;;  %v935_v24 = vpop.f32.mrf.mxu1  ;;  %v4805_v15 = vld [vmem:[%s6152_s7 + $0x3a0] sm:$0xff]  }
 0x108   :  { %4416 = vmatprep.subr.bf16.mxu0 %v4770_v16  ;;  %v894_v22 = vpop.f32.mrf.mxu0  ;;  %4438 = vmatprep.subr.bf16.mxu1 %v4772_v17  ;;  %v1119_v49 = vmax.f32 %v935_v24, 0.0  ;;  %v4806_v16 = vld [vmem:[%s6152_s7 + $0x358] sm:$0xff]  }
 0x109   :  { %v937_v27 = vpop.f32.mrf.mxu1  ;;  %v1117_v54 = vmax.f32 %v894_v22, 0.0  ;;  %v4807_v22 = vld [vmem:[%s6152_s7 + $0x318] sm:$0xff]  }
 0x10a   :  { %v896_v25 = vpop.f32.mrf.mxu0  ;;  %v1143_v3 = vpack.c.bf16 %v1119_v49, %v1119_v49  ;;  %v4809_v24 = vld [vmem:[%s6152_s7 + $0x398] sm:$0xff]   ;;  %v4812_v27 = vld [vmem:[%s6152_s7 + $0x3d0] sm:$0xff]  }
 0x10b   :  { %4417 = vmatpush3.bf16.msra.mxu0 %v4771_v19  ;;  %4439 = vmatpush3.bf16.msra.mxu1 %v4773_v20  ;;  %v938_v32 = vpop.f32.mrf.mxu1  ;;  %v1141_v1 = vpack.c.bf16 %v1117_v54, %v1117_v54  ;;  %v4808_v19 = vld [vmem:[%s6152_s7 + $0x3d8] sm:$0xff]   ;;  %v4810_v25 = vld [vmem:[%s6152_s7 + $0x350] sm:$0xff]  }
 0x10c   :  { %4418 = vmatprep.subr.bf16.mxu0 %v4774_v21  ;;  %v897_v30 = vpop.f32.mrf.mxu0  ;;  %4440 = vmatprep.subr.bf16.mxu1 %v4776_v23  ;;  %v4816_v32 = vld [vmem:[%s6152_s7 + $0x3c8] sm:$0xff]   ;;  %v4826_v54 = vld [vmem:[%s6152_s7 + $0x470] sm:$0xff]  }
 0x10d   :  { %v4813_v30 = vld [vmem:[%s6152_s7 + $0x390] sm:$0xff]  }
 0x10f   :  { %4419 = vmatpush3.bf16.msra.mxu0 %v4775_v26  ;;  %4441 = vmatpush3.bf16.msra.mxu1 %v4777_v28 }
 0x110   :  { %4420 = vmatprep.subr.bf16.mxu0 %v4778_v29  ;;  %4442 = vmatprep.subr.bf16.mxu1 %v4780_v31  ;;  %v4811_v29 = vld [vmem:[%s6152_s7 + $0x310] sm:$0xff]   ;;  %v4814_v31 = vld [vmem:[%s6152_s7 + $0x348] sm:$0xff]  }
 0x113   :  { %4421 = vmatpush3.bf16.msra.mxu0 %v4779_v33  ;;  %4443 = vmatpush3.bf16.msra.mxu1 %v4781_v34  ;;  %v4815_v33 = vld [vmem:[%s6152_s7 + $0x308] sm:$0xff]  }
 0x114   :  { %4422 = vmatprep.subr.bf16.mxu0 %v4782_v35  ;;  %4444 = vmatprep.subr.bf16.mxu1 %v4784_v36  ;;  %v4817_v34 = vld [vmem:[%s6152_s7 + $0x388] sm:$0xff]   ;;  %v4818_v35 = vld [vmem:[%s6152_s7 + $0x340] sm:$0xff]  }
 0x115   :  { %v5663_v44 = vpop.f32.mrf.mxu1  ;;  %v4820_v36 = vld [vmem:[%s6152_s7 + $0x3c0] sm:$0xff]  }
 0x116   :  { %v5657_v41 = vpop.f32.mrf.mxu0 }
 0x117   :  { %4423 = vmatpush3.bf16.msra.mxu0 %v4783_v37  ;;  %4445 = vmatpush3.bf16.msra.mxu1 %v4785_v38  ;;  %v5677_v55 = vpop.f32.mrf.mxu1  ;;  %v1118_v37 = vmax.f32 %v5610_v47, 0.0  ;;  %v4819_v38 = vld [vmem:[%s6152_s7 + $0x300] sm:$0xff]   ;;  %v4824_v47 = vld [vmem:[%s6152_s7 + $0x4f8] sm:$0xff]  }
 0x118   :  { %4424 = vmatprep.subr.bf16.mxu0 %v4786_v39  ;;  %v5672_v51 = vpop.f32.mrf.mxu0  ;;  %4446 = vmatprep.subr.bf16.mxu1 %v4788_v40  ;;  %v1116_v39 = vmax.f32 %v5605_v18, 0.0  ;;  %v4821_v40 = vld [vmem:[%s6152_s7 + $0x380] sm:$0xff]   ;;  %v1123_v45 = vmax.f32 %v5677_v55, 0.0 }
 0x119   :  { %v1019_v59 = vpop.f32.mrf.mxu1  ;;  %v1142_v18 = vpack.c.bf16 %v1118_v37, %v1118_v37  ;;  %v4861_v37 = vld [vmem:[%s6152_s7 + $0x5b0] sm:$0xff]  }
 0x11a   :  { %v978_v56 = vpop.f32.mrf.mxu0  ;;  %v1147_v49 = vpack.c.bf16 %v1123_v45, %v1123_v45  ;;  %v4832_v59 = vld [vmem:[%s6152_s7 + $0x4e8] sm:$0xff]   ;;  %v4866_v45 = vld [vmem:[%s6152_s7 + $0x560] sm:$0xff]  }
 0x11b   :  { %4425 = vmatpush3.bf16.msra.mxu0 %v4787_v43  ;;  %4447 = vmatpush3.bf16.msra.mxu1 %v4789_v48  ;;  %v1020_v2 = vpop.f32.mrf.mxu1  ;;  %v1121_v43 = vmax.f32 %v5672_v51, 0.0  ;;  %v4823_v48 = vld [vmem:[%s6152_s7 + $0x438] sm:$0xff]   ;;  %v4828_v51 = vld [vmem:[%s6152_s7 + $0x4f0] sm:$0xff]  }
 0x11c   :  { %4454 = vmatprep.subr.bf16.mxu0 %v4790_v50  ;;  %v979_v63 = vpop.f32.mrf.mxu0  ;;  %4476 = vmatprep.subr.bf16.mxu1 %v4792_v53  ;;  %v1140_v50 = vpack.c.bf16 %v1116_v39, %v1116_v39  ;;  %v4825_v53 = vld [vmem:[%s6152_s7 + $0x4b8] sm:$0xff]   ;;  %v4827_v56 = vld [vmem:[%s6152_s7 + $0x430] sm:$0xff]   ;;  %v4864_v39 = vld [vmem:[%s6152_s7 + $0x5e8] sm:$0xff]  }
 0x11d   :  { %v1145_v55 = vpack.c.bf16 %v1121_v43, %v1121_v43  ;;  %v4836_v63 = vld [vmem:[%s6152_s7 + $0x4e0] sm:$0xff]   ;;  %v4838_v2 = vld [vmem:[%s6152_s7 + $0x458] sm:$0xff]   ;;  %v4865_v43 = vld [vmem:[%s6152_s7 + $0x5a8] sm:$0xff]  }
 0x11e   :  { %2886 = vmatmul.mubr.bf16.vlgmr.msra.gmra.mxu0 %v1136_v60  ;;  %2926 = vmatmul.mubr.bf16.vlgmr.msra.gmra.mxu1 %v1138_v57  ;;  %v4829_v57 = vld [vmem:[%s6152_s7 + $0x4b0] sm:$0xff]   ;;  %v4831_v60 = vld [vmem:[%s6152_s7 + $0x428] sm:$0xff]  }
 0x11f   :  { %4455 = vmatpush3.bf16.msra.mxu0 %v4791_v58  ;;  %4477 = vmatpush3.bf16.msra.mxu1 %v4793_v61  ;;  %v4830_v58 = vld [vmem:[%s6152_s7 + $0x468] sm:$0xff]  }
 0x120   :  { %4456 = vmatprep.subr.bf16.mxu0 %v4794_v62  ;;  %4478 = vmatprep.subr.bf16.mxu1 %v4796_v0  ;;  %v4833_v61 = vld [vmem:[%s6152_s7 + $0x4a8] sm:$0xff]   ;;  %v4834_v62 = vld [vmem:[%s6152_s7 + $0x460] sm:$0xff]  }
 0x121   :  { %2965 = vmatprep.mubr.bf16.mxu0 %v1141_v1  ;;  %3005 = vmatprep.mubr.bf16.mxu1 %v1143_v3  ;;  %v4835_v0 = vld [vmem:[%s6152_s7 + $0x420] sm:$0xff]   ;;  %v4840_v3 = vld [vmem:[%s6152_s7 + $0x4d8] sm:$0xff]  }
 0x122   :  { %v4837_v1 = vld [vmem:[%s6152_s7 + $0x4a0] sm:$0xff]  }
 0x123   :  { %4457 = vmatpush3.bf16.msra.mxu0 %v4795_v4  ;;  %4479 = vmatpush3.bf16.msra.mxu1 %v4797_v5  ;;  %v4839_v4 = vld [vmem:[%s6152_s7 + $0x418] sm:$0xff]  }
 0x124   :  { %4458 = vmatprep.subr.bf16.mxu0 %v4798_v6  ;;  %4480 = vmatprep.subr.bf16.mxu1 %v4800_v7  ;;  %v4841_v5 = vld [vmem:[%s6152_s7 + $0x498] sm:$0xff]   ;;  %v4842_v6 = vld [vmem:[%s6152_s7 + $0x450] sm:$0xff]  }
 0x125   :  { %v5720_v14 = vpop.f32.mrf.mxu1  ;;  %v4844_v7 = vld [vmem:[%s6152_s7 + $0x4d0] sm:$0xff]  }
 0x126   :  { %v5715_v12 = vpop.f32.mrf.mxu0 }
 0x127   :  { %4459 = vmatpush3.bf16.msra.mxu0 %v4799_v8  ;;  %4481 = vmatpush3.bf16.msra.mxu1 %v4801_v10  ;;  %v5733_v20 = vpop.f32.mrf.mxu1  ;;  %v4843_v8 = vld [vmem:[%s6152_s7 + $0x410] sm:$0xff]  }
 0x128   :  { %4460 = vmatprep.subr.bf16.mxu0 %v4802_v11  ;;  %v5728_v17 = vpop.f32.mrf.mxu0  ;;  %4482 = vmatprep.subr.bf16.mxu1 %v4804_v9  ;;  %v4845_v10 = vld [vmem:[%s6152_s7 + $0x490] sm:$0xff]   ;;  %v4846_v11 = vld [vmem:[%s6152_s7 + $0x448] sm:$0xff]  }
 0x129   :  { %v1101_v23 = vpop.f32.mrf.mxu1  ;;  %v4848_v9 = vld [vmem:[%s6152_s7 + $0x4c8] sm:$0xff]  }
 0x12a   :  { %v1060_v21 = vpop.f32.mrf.mxu0  ;;  %v4851_v23 = vld [vmem:[%s6152_s7 + $0x400] sm:$0xff]  }
 0x12b   :  { %4461 = vmatpush3.bf16.msra.mxu0 %v4803_v13  ;;  %4483 = vmatpush3.bf16.msra.mxu1 %v4805_v15  ;;  %v1102_v28 = vpop.f32.mrf.mxu1  ;;  %v4847_v13 = vld [vmem:[%s6152_s7 + $0x408] sm:$0xff]   ;;  %v3193_v21 = vpop.xlane.xlu1 %3192 }
 0x12c   :  { %4462 = vmatprep.subr.bf16.mxu0 %v4806_v16  ;;  %v1061_v26 = vpop.f32.mrf.mxu0  ;;  %4484 = vmatprep.subr.bf16.mxu1 %v4808_v19  ;;  %v4849_v15 = vld [vmem:[%s6152_s7 + $0x488] sm:$0xff]   ;;  %v4850_v16 = vld [vmem:[%s6152_s7 + $0x440] sm:$0xff]   ;;  %v1127_v28 = vmax.f32 %v5733_v20, 0.0  ;;  %v4860_v20 = vld [vmem:[%s6152_s7 + $0x5f0] sm:$0xff]  }
 0x12d   :  { %v4852_v19 = vld [vmem:[%s6152_s7 + $0x4c0] sm:$0xff]   ;;  %v4854_v26 = vld [vmem:[%s6152_s7 + $0x578] sm:$0xff]  }
 0x12f   :  { %4463 = vmatpush3.bf16.msra.mxu0 %v4807_v22  ;;  %4485 = vmatpush3.bf16.msra.mxu1 %v4809_v24  ;;  %v1122_v22 = vmax.f32 %v5663_v44, 0.0  ;;  %v1120_v24 = vmax.f32 %v5657_v41, 0.0  ;;  %v4856_v44 = vld [vmem:[%s6152_s7 + $0x5f8] sm:$0xff]  }
 0x130   :  { %4464 = vmatprep.subr.bf16.mxu0 %v4810_v25  ;;  %4486 = vmatprep.subr.bf16.mxu1 %v4812_v27  ;;  %v4853_v25 = vld [vmem:[%s6152_s7 + $0x480] sm:$0xff]   ;;  %v1125_v27 = vmax.f32 %v5728_v17, 0.0  ;;  %v3196_v17 = vpop.xlane.xlu1 %3195 }
 0x131   :  { %v1146_v41 = vpack.c.bf16 %v1122_v22, %v1122_v22 }
 0x133   :  { %4465 = vmatpush3.bf16.msra.mxu0 %v4811_v29  ;;  %4487 = vmatpush3.bf16.msra.mxu1 %v4813_v30  ;;  %v4855_v29 = vld [vmem:[%s6152_s7 + $0x538] sm:$0xff]   ;;  %v1144_v30 = vpack.c.bf16 %v1120_v24, %v1120_v24 }
 0x134   :  { %4466 = vmatprep.subr.bf16.mxu0 %v4814_v31  ;;  %4488 = vmatprep.subr.bf16.mxu1 %v4816_v32  ;;  %v4857_v31 = vld [vmem:[%s6152_s7 + $0x5b8] sm:$0xff]   ;;  %v4858_v32 = vld [vmem:[%s6152_s7 + $0x570] sm:$0xff]  }
 0x137   :  { %4467 = vmatpush3.bf16.msra.mxu0 %v4815_v33  ;;  %4489 = vmatpush3.bf16.msra.mxu1 %v4817_v34  ;;  %v1149_v33 = vpack.c.bf16 %v1125_v27, %v1125_v27  ;;  %v1151_v34 = vpack.c.bf16 %v1127_v28, %v1127_v28 }
 0x138   :  { %4468 = vmatprep.subr.bf16.mxu0 %v4818_v35  ;;  %4490 = vmatprep.subr.bf16.mxu1 %v4820_v36  ;;  %v4859_v35 = vld [vmem:[%s6152_s7 + $0x530] sm:$0xff]   ;;  %v3198_v36 = vmul.f32 0.03125, %v3196_v17 }
 0x13b   :  { %4469 = vmatpush3.bf16.msra.mxu0 %v4819_v38  ;;  %4491 = vmatpush3.bf16.msra.mxu1 %v4821_v40  ;;  %v4862_v38 = vld [vmem:[%s6152_s7 + $0x568] sm:$0xff]   ;;  %v3197_v40 = vmul.f32 0.03125, %v3193_v21 }
 0x13c   :  { %4498 = vmatprep.subr.bf16.mxu0 %v4822_v42  ;;  %4520 = vmatprep.subr.bf16.mxu1 %v4824_v47  ;;  %v4863_v42 = vld [vmem:[%s6152_s7 + $0x528] sm:$0xff]   ;;  %v3200_v47 = vadd.f32 1e-12, %v3198_v36 }
 0x13e   :  { %2966 = vmatmul.mubr.bf16.vlgmr.msra.gmra.mxu0 %v1140_v50  ;;  %3006 = vmatmul.mubr.bf16.vlgmr.msra.gmra.mxu1 %v1142_v18  ;;  %v4868_v18 = vld [vmem:[%s6152_s7 + $0x5e0] sm:$0xff]   ;;  %4898 = vrsqrt.f32 %v3200_v47 }
 0x13f   :  { %4499 = vmatpush3.bf16.msra.mxu0 %v4823_v48  ;;  %4521 = vmatpush3.bf16.msra.mxu1 %v4825_v53  ;;  %v3199_v48 = vadd.f32 1e-12, %v3197_v40  ;;  %v4867_v50 = vld [vmem:[%s6152_s7 + $0x520] sm:$0xff]  }
 0x140   :  { %4500 = vmatprep.subr.bf16.mxu0 %v4826_v54  ;;  %4522 = vmatprep.subr.bf16.mxu1 %v4828_v51  ;;  %v4869_v53 = vld [vmem:[%s6152_s7 + $0x5a0] sm:$0xff]   ;;  %v4870_v54 = vld [vmem:[%s6152_s7 + $0x558] sm:$0xff]  }
 0x141   :  { %3045 = vmatprep.mubr.bf16.mxu0 %v1145_v55  ;;  %3085 = vmatprep.mubr.bf16.mxu1 %v1147_v49  ;;  %v4872_v51 = vld [vmem:[%s6152_s7 + $0x5d8] sm:$0xff]   ;;  %4900 = vrsqrt.f32 %v3199_v48 }
 0x142   :  { %v4871_v55 = vld [vmem:[%s6152_s7 + $0x518] sm:$0xff]  }
 0x143   :  { %4501 = vmatpush3.bf16.msra.mxu0 %v4827_v56  ;;  %4523 = vmatpush3.bf16.msra.mxu1 %v4829_v57  ;;  %v4873_v49 = vld [vmem:[%s6152_s7 + $0x598] sm:$0xff]   ;;  %v4874_v56 = vld [vmem:[%s6152_s7 + $0x550] sm:$0xff]  }
 0x144   :  { %4502 = vmatprep.subr.bf16.mxu0 %v4830_v58  ;;  %4524 = vmatprep.subr.bf16.mxu1 %v4832_v59  ;;  %v4876_v57 = vld [vmem:[%s6152_s7 + $0x5d0] sm:$0xff]  }
 0x145   :  { %v4875_v58 = vld [vmem:[%s6152_s7 + $0x510] sm:$0xff]  }
 0x146   :  { %v4877_v59 = vld [vmem:[%s6152_s7 + $0x590] sm:$0xff]  }
 0x147   :  { %4503 = vmatpush3.bf16.msra.mxu0 %v4831_v60  ;;  %4525 = vmatpush3.bf16.msra.mxu1 %v4833_v61  ;;  %v4878_v60 = vld [vmem:[%s6152_s7 + $0x548] sm:$0xff]  }
 0x148   :  { %4504 = vmatprep.subr.bf16.mxu0 %v4834_v62  ;;  %4526 = vmatprep.subr.bf16.mxu1 %v4836_v63  ;;  %v4880_v61 = vld [vmem:[%s6152_s7 + $0x5c8] sm:$0xff]  }
 0x149   :  { %v4879_v62 = vld [vmem:[%s6152_s7 + $0x508] sm:$0xff]  }
 0x14a   :  { %v4881_v63 = vld [vmem:[%s6152_s7 + $0x588] sm:$0xff]  }
 0x14b   :  { %4505 = vmatpush3.bf16.msra.mxu0 %v4835_v0  ;;  %4527 = vmatpush3.bf16.msra.mxu1 %v4837_v1  ;;  %v4882_v0 = vld [vmem:[%s6152_s7 + $0x540] sm:$0xff]   ;;  %v4899_v1 = vpop.eup %4898 }
 0x14c   :  { %4506 = vmatprep.subr.bf16.mxu0 %v4838_v2  ;;  %4528 = vmatprep.subr.bf16.mxu1 %v4840_v3  ;;  %v4884_v2 = vld [vmem:[%s6152_s7 + $0x5c0] sm:$0xff]  }
 0x14e   :  { %v4901_v3 = vpop.eup %4900 }
 0x14f   :  { %4507 = vmatpush3.bf16.msra.mxu0 %v4839_v4  ;;  %4529 = vmatpush3.bf16.msra.mxu1 %v4841_v5  ;;  %v1126_v4 = vmax.f32 %v5720_v14, 0.0  ;;  %v4883_v5 = vld [vmem:[%s6152_s7 + $0x500] sm:$0xff]  }
 0x150   :  { %4508 = vmatprep.subr.bf16.mxu0 %v4842_v6  ;;  %4530 = vmatprep.subr.bf16.mxu1 %v4844_v7  ;;  %v3204_v6 = vmul.f32 %v4899_v1, %v5460_v52  ;;  %v1124_v7 = vmax.f32 %v5715_v12, 0.0  ;;  %v4886_v14 = vld [vmem:[%s6148_s3 + $0x18] ss:$12 sps:$4 sm:$0xff]   ;;  %v4289_v52 = vld [vmem:[%s6147_s2] ss:$0 sm:$0xff] }
 0x152   :  { %v1148_v12 = vpack.c.bf16 %v1124_v7, %v1124_v7 }
 0x153   :  { %4509 = vmatpush3.bf16.msra.mxu0 %v4843_v8  ;;  %4531 = vmatpush3.bf16.msra.mxu1 %v4845_v10  ;;  %v4885_v8 = vld [vmem:[%s6152_s7 + $0x580] sm:$0xff]   ;;  %v3203_v10 = vmul.f32 %v4901_v3, %v5453_v46  ;;  %s4934_s7 = scalar_lea.vmem %s3981_s15, 32 }
 0x154   :  { %4510 = vmatprep.subr.bf16.mxu0 %v4846_v11  ;;  %4532 = vmatprep.subr.bf16.mxu1 %v4848_v9  ;;  %v1150_v11 = vpack.c.bf16 %v1126_v4, %v1126_v4  ;;  %v4957_v9 = vmov 0.0   ;;  %p4935_p0 = scmp.ne.s32.totalorder %s3981_s15, %s4934_s7  ;;  %p4940_p2 = scmp.lt.s32.totalorder %s4934_s7, %s4934_s7 }
 0x155   :  { %v3209_v46 = vmul.f32 %v4289_v52, %v3203_v10 }
 0x156   :  { %p4941_p3 = por %p4940_p2, %p4939_p1 }
 0x157   :  { %4511 = vmatpush3.bf16.msra.mxu0 %v4847_v13  ;;  %4533 = vmatpush3.bf16.msra.mxu1 %v4849_v15  ;;  %v3210_v13 = vmul.f32 %v4289_v52, %v3204_v6  ;;  %v4887_v15 = vld [vmem:[%s6148_s3] ss:$12 sps:$4 sm:$0xff]  }
 0x158   :  { %4512 = vmatprep.subr.bf16.mxu0 %v4850_v16  ;;  %4534 = vmatprep.subr.bf16.mxu1 %v4852_v19  ;;  %v4290_v16 = vld [vmem:[%s6147_s2 + $0x1] ss:$0 sm:$0xff]  ;;  %p4942_p4 = pnand %p4941_p3, %p4935_p0 }
 0x159   :  { %v5998_v19 = vadd.f32 %v4290_v16, %v3210_v13  ;;  %v6002_v21 = vadd.f32 %v4290_v16, %v3209_v46 }
 0x15b   :  { %4513 = vmatpush3.bf16.msra.mxu0 %v4851_v23  ;;  %4535 = vmatpush3.bf16.msra.mxu1 %v4853_v25  ;;  %v3239_v22 = vpack.c.bf16 %v5998_v19, %v6002_v21  ;;  %v4096_v25 = vld [vmem:[%s6147_s2 + $0x3] ss:$0 sm:$0xff] }
 0x15c   :  { %4542 = vmatprep.subr.bf16.mxu0 %v4854_v26  ;;  %4564 = vmatprep.subr.bf16.mxu1 %v4856_v44 }
 0x15e   :  { %3046 = vmatmul.mubr.bf16.vlgmr.msra.gmra.mxu0 %v1144_v30  ;;  %3086 = vmatmul.mubr.bf16.vlgmr.msra.gmra.mxu1 %v1146_v41 }
 0x15f   :  { %4543 = vmatpush3.bf16.msra.mxu0 %v4855_v29  ;;  %4565 = vmatpush3.bf16.msra.mxu1 %v4857_v31 }
 0x160   :  { %4544 = vmatprep.subr.bf16.mxu0 %v4858_v32  ;;  %4566 = vmatprep.subr.bf16.mxu1 %v4860_v20 }
 0x161   :  { %3125 = vmatprep.mubr.bf16.mxu0 %v1149_v33  ;;  %3165 = vmatprep.mubr.bf16.mxu1 %v1151_v34 }
 0x163   :  { %4545 = vmatpush3.bf16.msra.mxu0 %v4859_v35  ;;  %4567 = vmatpush3.bf16.msra.mxu1 %v4861_v37 }
 0x164   :  { %4546 = vmatprep.subr.bf16.mxu0 %v4862_v38  ;;  %4568 = vmatprep.subr.bf16.mxu1 %v4864_v39 }
 0x167   :  { %4547 = vmatpush3.bf16.msra.mxu0 %v4863_v42  ;;  %4569 = vmatpush3.bf16.msra.mxu1 %v4865_v43 }
 0x168   :  { %4548 = vmatprep.subr.bf16.mxu0 %v4866_v45  ;;  %4570 = vmatprep.subr.bf16.mxu1 %v4868_v18 }
 0x16b   :  { %4549 = vmatpush3.bf16.msra.mxu0 %v4867_v50  ;;  %4571 = vmatpush3.bf16.msra.mxu1 %v4869_v53 }
 0x16c   :  { %4550 = vmatprep.subr.bf16.mxu0 %v4870_v54  ;;  %4572 = vmatprep.subr.bf16.mxu1 %v4872_v51 }
 0x16f   :  { %4551 = vmatpush3.bf16.msra.mxu0 %v4871_v55  ;;  %4573 = vmatpush3.bf16.msra.mxu1 %v4873_v49 }
 0x170   :  { %4552 = vmatprep.subr.bf16.mxu0 %v4874_v56  ;;  %4574 = vmatprep.subr.bf16.mxu1 %v4876_v57 }
 0x173   :  { %4553 = vmatpush3.bf16.msra.mxu0 %v4875_v58  ;;  %4575 = vmatpush3.bf16.msra.mxu1 %v4877_v59 }
 0x174   :  { %4554 = vmatprep.subr.bf16.mxu0 %v4878_v60  ;;  %4576 = vmatprep.subr.bf16.mxu1 %v4880_v61 }
 0x177   :  { %4555 = vmatpush3.bf16.msra.mxu0 %v4879_v62  ;;  %4577 = vmatpush3.bf16.msra.mxu1 %v4881_v63 }
 0x178   :  { %4556 = vmatprep.subr.bf16.mxu0 %v4882_v0  ;;  %4578 = vmatprep.subr.bf16.mxu1 %v4884_v2 }
 0x17b   :  { %4557 = vmatpush3.bf16.msra.mxu0 %v4883_v5  ;;  %4579 = vmatpush3.bf16.msra.mxu1 %v4885_v8 }
 0x17c   :  { %4612 = vmatprep.subr.bf16.mxu0 %v4957_v9  ;;  %4620 = vmatprep.subr.bf16.mxu1 %v4957_v9 }
 0x17e   :  { %3126 = vmatmul.mubr.bf16.vlgmr.msra.gmra.mxu0 %v1148_v12  ;;  %3166 = vmatmul.mubr.bf16.vlgmr.msra.gmra.mxu1 %v1150_v11 }
 0x17f   :  { %4613 = vmatpush3.bf16.msra.mxu0 %v4886_v14  ;;  %4616 = vmatprep.mubr.msk.bf16.mxu0 %vm4958_vm2, %v4957_v9 }
 0x180   :  { %4614 = vmatprep.subr.bf16.mxu0 %v4957_v9  ;;  %4622 = vmatprep.mubr.msk.bf16.mxu1 %vm4958_vm2, %v4957_v9 }
 0x183   :  { %4615 = vmatpush3.bf16.msra.mxu0 %v4887_v15 }
 0x184   :  { %4626 = vmatprep.subr.bf16.mxu0 %v4957_v9 }
 0x186   :  { %4617 = vmatmul.mubr.msk.bf16.vlgmr.msra.gmra.mxu0 %vm3177_vm0, %v3239_v22 }
 0x187   :  { %4628 = vmatprep.mubr.msk.bf16.mxu0 %vm4958_vm2, %v4957_v9 }
 0x19d   :  { %v4360_v24 = vpop.f32.mrf.mxu1 }
 0x19e   :  { %v4338_v23 = vpop.f32.mrf.mxu0 }
 0x19f   :  { %v4361_v27 = vpop.f32.mrf.mxu1 }
 0x1a0   :  { %v4339_v26 = vpop.f32.mrf.mxu0  ;;  %v4362_v41 = vadd.f32 %v4361_v27, %v4360_v24 }
 0x1a1   :  { %v4340_v44 = vadd.f32 %v4339_v26, %v4338_v23  ;;  %v4363_v30 = vpop.f32.mrf.mxu1 }
 0x1a2   :  { %v4341_v28 = vpop.f32.mrf.mxu0 }
 0x1a3   :  { %v2728_v29 = vadd.f32 %v4340_v44, %v4096_v25  ;;  %v4364_v17 = vpop.f32.mrf.mxu1 }
 0x1a4   :  { %v4342_v31 = vpop.f32.mrf.mxu0 }
 0x1a5   :  { %v2768_v32 = vadd.f32 %v4362_v41, %v2728_v29 }
 0x1be   :  { %v4382_v20 = vpop.f32.mrf.mxu0  ;;  %v4404_v33 = vpop.f32.mrf.mxu1 }
 0x1c0   :  { %v4383_v34 = vpop.f32.mrf.mxu0  ;;  %v4405_v36 = vpop.f32.mrf.mxu1 }
 0x1c1   :  { %v4384_v35 = vadd.f32 %v4383_v34, %v4382_v20  ;;  %v4406_v38 = vadd.f32 %v4405_v36, %v4404_v33  ;;  %v4291_v20 = vld [vmem:[%s6147_s2 + $0x4] ss:$0 sm:$0xff] }
 0x1c2   :  { %v4385_v37 = vpop.f32.mrf.mxu0  ;;  %v4407_v40 = vpop.f32.mrf.mxu1 }
 0x1c3   :  { %v2808_v39 = vadd.f32 %v4384_v35, %v2768_v32 }
 0x1c4   :  { %v4386_v42 = vpop.f32.mrf.mxu0  ;;  %v4408_v43 = vpop.f32.mrf.mxu1 }
 0x1c5   :  { %v2848_v47 = vadd.f32 %v4406_v38, %v2808_v39 }
 0x1de   :  { %v4426_v45 = vpop.f32.mrf.mxu0  ;;  %v4448_v18 = vpop.f32.mrf.mxu1 }
 0x1e0   :  { %v4427_v48 = vpop.f32.mrf.mxu0  ;;  %v4449_v53 = vpop.f32.mrf.mxu1 }
 0x1e1   :  { %v4428_v50 = vadd.f32 %v4427_v48, %v4426_v45  ;;  %v4450_v51 = vadd.f32 %v4449_v53, %v4448_v18  ;;  %v3217_v45 = vld [vmem:[%s6146_s1] sm:$0xff]  ;;  %v3218_v53 = vld [vmem:[%s6146_s1 + $0x8] sm:$0xff]  ;;  %s4962_s1 = smov 64  }
 0x1e2   :  { %v4429_v54 = vpop.f32.mrf.mxu0  ;;  %v4451_v49 = vpop.f32.mrf.mxu1 }
 0x1e3   :  { %v2888_v55 = vadd.f32 %v4428_v50, %v2848_v47 }
 0x1e4   :  { %v4430_v56 = vpop.f32.mrf.mxu0  ;;  %v4452_v58 = vpop.f32.mrf.mxu1 }
 0x1e5   :  { %v2928_v57 = vadd.f32 %v4450_v51, %v2888_v55 }
 0x1fe   :  { %v4470_v59 = vpop.f32.mrf.mxu0  ;;  %v4492_v60 = vpop.f32.mrf.mxu1 }
 0x200   :  { %v4471_v61 = vpop.f32.mrf.mxu0  ;;  %v4493_v63 = vpop.f32.mrf.mxu1 }
 0x201   :  { %v4472_v62 = vadd.f32 %v4471_v61, %v4470_v59  ;;  %v4494_v1 = vadd.f32 %v4493_v63, %v4492_v60 }
 0x202   :  { %v4473_v0 = vpop.f32.mrf.mxu0  ;;  %v4495_v3 = vpop.f32.mrf.mxu1 }
 0x203   :  { %v2968_v2 = vadd.f32 %v4472_v62, %v2928_v57 }
 0x204   :  { %v4474_v4 = vpop.f32.mrf.mxu0  ;;  %v4496_v6 = vpop.f32.mrf.mxu1 }
 0x205   :  { %v3008_v5 = vadd.f32 %v4494_v1, %v2968_v2 }
 0x21e   :  { %v4514_v7 = vpop.f32.mrf.mxu0  ;;  %v4536_v8 = vpop.f32.mrf.mxu1 }
 0x220   :  { %v4515_v10 = vpop.f32.mrf.mxu0  ;;  %v4537_v14 = vpop.f32.mrf.mxu1 }
 0x221   :  { %v4516_v11 = vadd.f32 %v4515_v10, %v4514_v7  ;;  %v4538_v12 = vadd.f32 %v4537_v14, %v4536_v8 }
 0x222   :  { %v4517_v52 = vpop.f32.mrf.mxu0  ;;  %v4539_v46 = vpop.f32.mrf.mxu1 }
 0x223   :  { %v3048_v13 = vadd.f32 %v4516_v11, %v3008_v5 }
 0x224   :  { %v4518_v15 = vpop.f32.mrf.mxu0  ;;  %v4540_v22 = vpop.f32.mrf.mxu1 }
 0x225   :  { %v3088_v16 = vadd.f32 %v4538_v12, %v3048_v13 }
 0x23e   :  { %v4558_v23 = vpop.f32.mrf.mxu0  ;;  %v4580_v24 = vpop.f32.mrf.mxu1 }
 0x240   :  { %v4559_v25 = vpop.f32.mrf.mxu0  ;;  %v4581_v44 = vpop.f32.mrf.mxu1 }
 0x241   :  { %v4560_v26 = vadd.f32 %v4559_v25, %v4558_v23  ;;  %v4582_v28 = vadd.f32 %v4581_v44, %v4580_v24 }
 0x242   :  { %v4561_v27 = vpop.f32.mrf.mxu0  ;;  %v4583_v29 = vpop.f32.mrf.mxu1 }
 0x243   :  { %v3128_v41 = vadd.f32 %v4560_v26, %v3088_v16 }
 0x244   :  { %v4562_v30 = vpop.f32.mrf.mxu0  ;;  %v4584_v32 = vpop.f32.mrf.mxu1 }
 0x245   :  { %v6013_v31 = vadd.f32 %v4582_v28, %v3128_v41 }
 0x246   :  { %v3294_v17 = vpop.f32.mrf.mxu0 }
 0x247   :  { %v3295_v35 = vadd.f32 %v4291_v20, %v3294_v17 }
 0x248   :  { %v4618_v33 = vpop.f32.mrf.mxu0 }
 0x24a   :  { %v3297_v34 = vpop.f32.mrf.mxu0 }
 0x24b   :  { %v3298_v36 = vadd.f32 %v4291_v20, %v3297_v34 }
 0x24c   :  { %v4619_v37 = vpop.f32.mrf.mxu0 }
 0x24d   :  { %v6018_v38 = vpack.c.bf16 %v3298_v36, %v3295_v35 }
 0x24f   :  { %3426 = vrot.lane.b32.xlu1 %v6018_v38, %s4959_s21  ;;  %3303 = vrot.lane.b32.xlu0 %v6018_v38, %s4960_s6 }
 0x253   :  { %3424 = vrot.lane.b32.xlu1 %v6018_v38, %s4961_s22 }
 0x2c1   :  { %v3304_v39 = vpop.permute.xlu0 %3303  ;;  %v3427_v42 = vpop.permute.xlu1 %3426 }
 0x2c2   :  { %v3310_v40 = vsel %vm3305_vm3, %v3304_v39, 0  ;;  %v3432_v47 = vsel %vm3305_vm3, %v3427_v42, 0  ;;  %v4889_v39 = vld [vmem:[%s6148_s3 + $0x1c] ss:$12 sps:$4 sm:$0xff]  }
 0x2c3   :  { %4621 = vmatpush3.bf16.xpose.msra.mxu1 %v3310_v40 }
 0x2c4   :  { %4632 = vmatprep.subr.bf16.mxu1 %v4957_v9 }
 0x2c5   :  { %v3425_v43 = vpop.permute.xlu1 %3424 }
 0x2ca   :  { %4623 = vmatmul.mubr.msk.bf16.vlgmr.msra.gmra.mxu1 %vm3305_vm3, %v6018_v38 }
 0x2cb   :  { %4633 = vmatpush3.bf16.xpose.msra.mxu1 %v3432_v47  ;;  %4634 = vmatprep.mubr.msk.bf16.mxu1 %vm4958_vm2, %v4957_v9 }
 0x2cc   :  { %4644 = vmatprep.subr.bf16.mxu1 %v4957_v9 }
 0x2d2   :  { %4635 = vmatmul.mubr.msk.bf16.vlgmr.msra.gmra.mxu1 %vm3305_vm3, %v3425_v43 }
 0x2d3   :  { %4646 = vmatprep.mubr.msk.bf16.mxu1 %vm4958_vm2, %v4957_v9  ;;  %4645 = vmatpush3.bf16.msra.mxu1 %v4889_v39 }
 0x2d4   :  { %4656 = vmatprep.subr.bf16.mxu1 %v4957_v9 }
 0x38a   :  { %v3346_v18 = vpop.f32.mrf.mxu1 }
 0x38b   :  { %v3347_v48 = vadd.f32 %v3346_v18, %v3217_v45 }
 0x38c   :  { %v4624_v50 = vpop.f32.mrf.mxu1 }
 0x38d   :  { %v3353_v54 = vsel %vm3305_vm3, %v3347_v48, -inf }
 0x38e   :  { %3354 = vmax.xlane.f32.xlu1 %v3353_v54  ;;  %v3349_v51 = vpop.f32.mrf.mxu1 }
 0x38f   :  { %v3350_v55 = vadd.f32 %v3349_v51, %v3218_v53 }
 0x390   :  { %v4625_v49 = vpop.f32.mrf.mxu1 }
 0x391   :  { %v3356_v56 = vsel %vm3305_vm3, %v3350_v55, -inf }
 0x392   :  { %3357 = vmax.xlane.f32.xlu0 %v3356_v56  ;;  %v3468_v57 = vpop.f32.mrf.mxu1 }
 0x393   :  { %v3469_v58 = vadd.f32 %v3468_v57, %v3217_v45 }
 0x394   :  { %v4636_v59 = vpop.f32.mrf.mxu1 }
 0x395   :  { %v3475_v60 = vsel %vm3305_vm3, %v3469_v58, -inf }
 0x396   :  { %3476 = vmax.xlane.f32.xlu0 %v3475_v60  ;;  %v3471_v61 = vpop.f32.mrf.mxu1 }
 0x397   :  { %v3472_v62 = vadd.f32 %v3471_v61, %v3218_v53 }
 0x398   :  { %v4637_v63 = vpop.f32.mrf.mxu1 }
 0x399   :  { %v3478_v0 = vsel %vm3305_vm3, %v3472_v62, -inf }
 0x39a   :  { %3479 = vmax.xlane.f32.xlu0 %v3478_v0 }
 0x417   :  { %v3355_v1 = vpop.xlane.xlu1 %3354 }
 0x418   :  { %v3359_v2 = vsub.f32 %v3347_v48, %v3355_v1 }
 0x41a   :  { %v3361_v3 = vmul.f32 1.442695, %v3359_v2 }
 0x41b   :  { %v3358_v4 = vpop.xlane.xlu0 %3357 }
 0x41c   :  { %4902 = vpow2.f32 %v3361_v3  ;;  %v3360_v5 = vsub.f32 %v3350_v55, %v3358_v4 }
 0x41e   :  { %v3363_v6 = vmul.f32 1.442695, %v3360_v5 }
 0x41f   :  { %v3477_v7 = vpop.xlane.xlu0 %3476 }
 0x420   :  { %4904 = vpow2.f32 %v3363_v6  ;;  %v3481_v8 = vsub.f32 %v3469_v58, %v3477_v7  ;;  %v4303_v58 = vld [vmem:[%s6147_s2 + $0x5] ss:$0 sm:$0xff] }
 0x422   :  { %v3483_v10 = vmul.f32 1.442695, %v3481_v8 }
 0x423   :  { %v3480_v11 = vpop.xlane.xlu0 %3479 }
 0x424   :  { %4906 = vpow2.f32 %v3483_v10  ;;  %v3482_v14 = vsub.f32 %v3472_v62, %v3480_v11 }
 0x426   :  { %v3485_v52 = vmul.f32 1.442695, %v3482_v14 }
 0x428   :  { %4908 = vpow2.f32 %v3485_v52 }
 0x429   :  { %v4903_v12 = vpop.eup %4902 }
 0x42a   :  { %v3365_v13 = vsel %vm3305_vm3, %v4903_v12, 0.0 }
 0x42b   :  { %3366 = vadd.xlane.f32.xlu1 %v3365_v13 }
 0x42d   :  { %v4905_v46 = vpop.eup %4904 }
 0x42e   :  { %v3368_v15 = vsel %vm3305_vm3, %v4905_v46, 0.0 }
 0x42f   :  { %3369 = vadd.xlane.f32.xlu0 %v3368_v15 }
 0x431   :  { %v4907_v16 = vpop.eup %4906 }
 0x432   :  { %v3487_v22 = vsel %vm3305_vm3, %v4907_v16, 0.0 }
 0x433   :  { %3488 = vadd.xlane.f32.xlu1 %v3487_v22 }
 0x435   :  { %v4909_v23 = vpop.eup %4908 }
 0x436   :  { %v3490_v24 = vsel %vm3305_vm3, %v4909_v23, 0.0 }
 0x437   :  { %3491 = vadd.xlane.f32.xlu0 %v3490_v24 }
 0x444   :  { %3376 = vrot.lane.b32.xlu1 %v6018_v38, %s4962_s1  ;;  %s4964_s1 = smov 32  }
 0x44d   :  { %3498 = vrot.lane.b32.xlu0 %v6018_v38, %s4963_s27  ;;  %v4888_v38 = vld [vmem:[%s6148_s3 + $0x4] ss:$12 sps:$4 sm:$0xff]  }
 0x4b4   :  { %v3367_v25 = vpop.xlane.xlu1 %3366 }
 0x4b5   :  { %4910 = vrcp.f32 %v3367_v25 }
 0x4b8   :  { %v3370_v26 = vpop.xlane.xlu0 %3369 }
 0x4b9   :  { %4912 = vrcp.f32 %v3370_v26 }
 0x4bc   :  { %v3489_v44 = vpop.xlane.xlu1 %3488 }
 0x4bd   :  { %4914 = vrcp.f32 %v3489_v44 }
 0x4c0   :  { %v3377_v27 = vpop.permute.xlu1 %3376  ;;  %v3492_v28 = vpop.xlane.xlu0 %3491 }
 0x4c1   :  { %4916 = vrcp.f32 %v3492_v28  ;;  %4627 = vmatpush3.bf16.msra.mxu0 %v3377_v27  ;;  %v4304_v27 = vld [vmem:[%s6147_s2 + $0x6] ss:$0 sm:$0xff] }
 0x4c2   :  { %4638 = vmatprep.subr.bf16.mxu0 %v4957_v9  ;;  %v4911_v41 = vpop.eup %4910 }
 0x4c3   :  { %v3373_v30 = vmul.f32 %v4911_v41, %v4903_v12 }
 0x4c4   :  { %v3499_v20 = vpop.permute.xlu0 %3498 }
 0x4c6   :  { %v4913_v29 = vpop.eup %4912 }
 0x4c7   :  { %v3374_v32 = vmul.f32 %v4913_v29, %v4905_v46  ;;  %v4891_v46 = vld [vmem:[%s6148_s3 + $0x8] ss:$12 sps:$4 sm:$0xff]  }
 0x4c9   :  { %v3375_v17 = vpack.c.bf16 %v3374_v32, %v3373_v30  ;;  %v4305_v30 = vld [vmem:[%s6147_s2 + $0x7] ss:$0 sm:$0xff] }
 0x4ca   :  { %v4915_v33 = vpop.eup %4914 }
 0x4cb   :  { %4629 = vmatmul.mubr.msk.bf16.vlgmr.msra.gmra.mxu0 %vm3305_vm3, %v3375_v17  ;;  %v3495_v35 = vmul.f32 %v4915_v33, %v4907_v16 }
 0x4cc   :  { %4639 = vmatpush3.bf16.msra.mxu0 %v3499_v20  ;;  %4640 = vmatprep.mubr.msk.bf16.mxu0 %vm4958_vm2, %v4957_v9 }
 0x4cd   :  { %4650 = vmatprep.subr.bf16.mxu0 %v4957_v9 }
 0x4ce   :  { %v4917_v34 = vpop.eup %4916 }
 0x4cf   :  { %v3496_v36 = vmul.f32 %v4917_v34, %v4909_v23  ;;  %v4892_v34 = vld [vmem:[%s6149_s4 + $0x18] sm:$0xff]  }
 0x4d1   :  { %v3497_v37 = vpack.c.bf16 %v3496_v36, %v3495_v35  ;;  %v4893_v35 = vld [vmem:[%s6149_s4 + $0x10] sm:$0xff]   ;;  %v4894_v36 = vld [vmem:[%s6149_s4 + $0x8] sm:$0xff]  }
 0x4d3   :  { %4641 = vmatmul.mubr.msk.bf16.vlgmr.msra.gmra.mxu0 %vm3305_vm3, %v3497_v37  ;;  %v4895_v37 = vld [vmem:[%s6149_s4] sm:$0xff]  }
 0x4d4   :  { %4652 = vmatprep.mubr.msk.bf16.mxu0 %vm4958_vm2, %v4957_v9  ;;  %4651 = vmatpush3.bf16.msra.mxu0 %v4888_v38  ;;  %v4306_v38 = vld [vmem:[%s6147_s2 + $0x8] ss:$0 sm:$0xff] }
 0x4d5   :  { %4664 = vmatprep.subr.bf16.mxu0 %v4957_v9 }
 0x58b   :  { %v3416_v40 = vpop.f32.mrf.mxu0 }
 0x58d   :  { %v4630_v42 = vpop.f32.mrf.mxu0 }
 0x58f   :  { %v3419_v47 = vpop.f32.mrf.mxu0 }
 0x590   :  { %v3423_v43 = vpack.c.bf16 %v3419_v47, %v3416_v40 }
 0x591   :  { %v4631_v45 = vpop.f32.mrf.mxu0 }
 0x592   :  { %4653 = vmatmul.mubr.msk.bf16.vlgmr.msra.gmra.mxu0 %vm3305_vm3, %v3423_v43 }
 0x593   :  { %v3538_v18 = vpop.f32.mrf.mxu0  ;;  %4672 = vmatprep.mubr.msk.bf16.mxu0 %vm4958_vm2, %v4957_v9  ;;  %4665 = vmatpush3.bf16.msra.mxu0 %v4892_v34 }
 0x594   :  { %4666 = vmatprep.subr.bf16.mxu0 %v4957_v9 }
 0x595   :  { %v4642_v48 = vpop.f32.mrf.mxu0 }
 0x597   :  { %v3541_v50 = vpop.f32.mrf.mxu0  ;;  %4667 = vmatpush3.bf16.msra.mxu0 %v4893_v35 }
 0x598   :  { %v3545_v53 = vpack.c.bf16 %v3541_v50, %v3538_v18  ;;  %4668 = vmatprep.subr.bf16.mxu0 %v4957_v9 }
 0x599   :  { %v4643_v54 = vpop.f32.mrf.mxu0 }
 0x59a   :  { %4647 = vmatmul.mubr.msk.bf16.vlgmr.msra.gmra.mxu1 %vm3305_vm3, %v3545_v53 }
 0x59b   :  { %4660 = vmatprep.mubr.msk.bf16.mxu1 %vm4958_vm2, %v4957_v9  ;;  %4669 = vmatpush3.bf16.msra.mxu0 %v4894_v36 }
 0x59c   :  { %4670 = vmatprep.subr.bf16.mxu0 %v4957_v9 }
 0x59f   :  { %4671 = vmatpush3.bf16.msra.mxu0 %v4895_v37 }
 0x652   :  { %v3639_v51 = vpop.f32.mrf.mxu0 }
 0x654   :  { %v4654_v55 = vpop.f32.mrf.mxu0 }
 0x656   :  { %v3642_v49 = vpop.f32.mrf.mxu0 }
 0x658   :  { %v4655_v56 = vpop.f32.mrf.mxu0 }
 0x65a   :  { %v3589_v57 = vpop.f32.mrf.mxu1 }
 0x65b   :  { %v3640_v59 = vadd.f32 %v3639_v51, %v3589_v57 }
 0x65c   :  { %v4648_v60 = vpop.f32.mrf.mxu1 }
 0x65d   :  { %v3651_v61 = vadd.f32 %v4303_v58, %v3640_v59 }
 0x65e   :  { %v3592_v62 = vpop.f32.mrf.mxu1 }
 0x65f   :  { %v3643_v63 = vadd.f32 %v3642_v49, %v3592_v62  ;;  %v3653_v0 = vadd.f32 %v3651_v61, %v6002_v21 }
 0x660   :  { %v4649_v1 = vpop.f32.mrf.mxu1 }
 0x661   :  { %v3652_v2 = vadd.f32 %v4303_v58, %v3643_v63  ;;  %v3657_v3 = vsel %vm3177_vm0, %v3653_v0, 0.0 }
 0x662   :  { %3658 = vadd.xlane.f32.xlu1 %v3657_v3  ;;  %v4310_v3 = vld [vmem:[%s6147_s2 + $0x9] ss:$0 sm:$0xff] }
 0x663   :  { %v3654_v4 = vadd.f32 %v3652_v2, %v5998_v19  ;;  %v4890_v19 = vld [vmem:[%s6148_s3 + $0x20] ss:$12 sps:$4 sm:$0xff]  }
 0x664   :  { %4657 = vmatpush3.bf16.msra.mxu1 %v4890_v19 }
 0x665   :  { %v3660_v5 = vsel %vm3177_vm0, %v3654_v4, 0.0  ;;  %4658 = vmatprep.subr.bf16.mxu1 %v4957_v9 }
 0x666   :  { %3661 = vadd.xlane.f32.xlu0 %v3660_v5 }
 0x668   :  { %4659 = vmatpush3.bf16.msra.mxu1 %v4891_v46 }
 0x669   :  { %4676 = vmatprep.subr.bf16.mxu1 %v4957_v9 }
 0x6eb   :  { %v3659_v6 = vpop.xlane.xlu1 %3658 }
 0x6ec   :  { %v3663_v7 = vmul.f32 0.03125, %v3659_v6 }
 0x6ee   :  { %v3665_v8 = vsub.f32 %v3653_v0, %v3663_v7 }
 0x6ef   :  { %v3662_v10 = vpop.xlane.xlu0 %3661 }
 0x6f0   :  { %v3664_v11 = vmul.f32 0.03125, %v3662_v10  ;;  %v3667_v14 = vmul.f32 %v3665_v8, %v3665_v8 }
 0x6f2   :  { %v3666_v52 = vsub.f32 %v3654_v4, %v3664_v11  ;;  %v3669_v12 = vsel %vm3177_vm0, %v3667_v14, 0.0 }
 0x6f3   :  { %3670 = vadd.xlane.f32.xlu1 %v3669_v12 }
 0x6f4   :  { %v3668_v21 = vmul.f32 %v3666_v52, %v3666_v52 }
 0x6f6   :  { %v3672_v13 = vsel %vm3177_vm0, %v3668_v21, 0.0 }
 0x6f7   :  { %3673 = vadd.xlane.f32.xlu0 %v3672_v13 }
 0x77c   :  { %v3671_v15 = vpop.xlane.xlu1 %3670 }
 0x77d   :  { %v3675_v16 = vmul.f32 0.03125, %v3671_v15 }
 0x77f   :  { %v3677_v22 = vadd.f32 1e-12, %v3675_v16 }
 0x780   :  { %v3674_v23 = vpop.xlane.xlu0 %3673 }
 0x781   :  { %4918 = vrsqrt.f32 %v3677_v22  ;;  %v3676_v24 = vmul.f32 0.03125, %v3674_v23 }
 0x783   :  { %v3678_v25 = vadd.f32 1e-12, %v3676_v24 }
 0x785   :  { %4920 = vrsqrt.f32 %v3678_v25 }
 0x78e   :  { %v4919_v26 = vpop.eup %4918 }
 0x78f   :  { %v3681_v44 = vmul.f32 %v4919_v26, %v3665_v8  ;;  %v4896_v26 = vld [vmem:[%s6148_s3 + $0x48] ss:$12 sps:$4 sm:$0xff]  }
 0x791   :  { %v3687_v29 = vmul.f32 %v4304_v27, %v3681_v44  ;;  %v4897_v44 = vld [vmem:[%s6148_s3 + $0x30] ss:$12 sps:$4 sm:$0xff]  }
 0x792   :  { %v4921_v28 = vpop.eup %4920 }
 0x793   :  { %v3682_v41 = vmul.f32 %v4921_v28, %v3666_v52  ;;  %v3693_v17 = vadd.f32 %v4305_v30, %v3687_v29 }
 0x795   :  { %v3688_v32 = vmul.f32 %v4304_v27, %v3682_v41 }
 0x797   :  { %v3694_v20 = vadd.f32 %v4305_v30, %v3688_v32 }
 0x799   :  { %v3695_v33 = vpack.c.bf16 %v3694_v20, %v3693_v17 }
 0x79b   :  { %4661 = vmatmul.mubr.msk.bf16.vlgmr.msra.gmra.mxu1 %vm3177_vm0, %v3695_v33 }
 0x79c   :  { %4680 = vmatprep.mubr.msk.bf16.mxu1 %vm4958_vm2, %v4957_v9  ;;  %4677 = vmatpush3.bf16.msra.mxu1 %v4896_v26 }
 0x79d   :  { %4678 = vmatprep.subr.bf16.mxu1 %v4957_v9  ;;  %v4317_v9 = vld [vmem:[%s6147_s2 + $0xb] ss:$0 sm:$0xff] }
 0x7a0   :  { %4679 = vmatpush3.bf16.msra.mxu1 %v4897_v44 }
 0x85b   :  { %v3750_v39 = vpop.f32.mrf.mxu1 }
 0x85c   :  { %v3751_v40 = vadd.f32 %v4306_v38, %v3750_v39 }
 0x85d   :  { %v4662_v42 = vpop.f32.mrf.mxu1 }
 0x85e   :  { %v3757_v47 = vmul.f32 %v3751_v40, %v3751_v40 }
 0x85f   :  { %v3753_v43 = vpop.f32.mrf.mxu1 }
 0x860   :  { %v3759_v45 = vmul.f32 %v3757_v47, %v3751_v40  ;;  %v3754_v18 = vadd.f32 %v4306_v38, %v3753_v43 }
 0x861   :  { %v4663_v48 = vpop.f32.mrf.mxu1 }
 0x862   :  { %v3761_v50 = vmul.f32 0.044715, %v3759_v45  ;;  %v3758_v53 = vmul.f32 %v3754_v18, %v3754_v18  ;;  %v4318_v48 = vld [vmem:[%s6147_s2 + $0x2] ss:$0 sm:$0xff] }
 0x864   :  { %v3763_v54 = vadd.f32 %v3761_v50, %v3751_v40  ;;  %v3760_v51 = vmul.f32 %v3758_v53, %v3754_v18 }
 0x866   :  { %v3765_v55 = vmul.f32 0.7978846, %v3763_v54  ;;  %v3762_v49 = vmul.f32 0.044715, %v3760_v51 }
 0x868   :  { %4922 = vtanh.f32 %v3765_v55  ;;  %v3764_v56 = vadd.f32 %v3762_v49, %v3754_v18 }
 0x86a   :  { %v3766_v57 = vmul.f32 0.7978846, %v3764_v56 }
 0x86c   :  { %4924 = vtanh.f32 %v3766_v57 }
 0x875   :  { %v4923_v58 = vpop.eup %4922 }
 0x876   :  { %v3769_v59 = vadd.f32 1.0, %v4923_v58 }
 0x878   :  { %v3771_v61 = vmul.f32 0.5, %v3769_v59 }
 0x879   :  { %v4925_v60 = vpop.eup %4924 }
 0x87a   :  { %v3770_v62 = vadd.f32 1.0, %v4925_v60  ;;  %v3773_v0 = vmul.f32 %v3771_v61, %v3751_v40 }
 0x87c   :  { %v3772_v63 = vmul.f32 0.5, %v3770_v62 }
 0x87e   :  { %v3774_v1 = vmul.f32 %v3772_v63, %v3754_v18 }
 0x880   :  { %v3775_v2 = vpack.c.bf16 %v3774_v1, %v3773_v0 }
 0x882   :  { %4673 = vmatmul.mubr.msk.bf16.vlgmr.msra.gmra.mxu0 %vm608_vm1, %v3775_v2 }
 0x942   :  { %v3842_v4 = vpop.f32.mrf.mxu0 }
 0x943   :  { %v3843_v5 = vadd.f32 %v4310_v3, %v3842_v4 }
 0x944   :  { %v4674_v6 = vpop.f32.mrf.mxu0 }
 0x945   :  { %v3849_v7 = vadd.f32 %v3843_v5, %v3693_v17  ;;  %v4316_v17 = vld [vmem:[%s6147_s2 + $0xa] ss:$0 sm:$0xff] }
 0x946   :  { %v3845_v8 = vpop.f32.mrf.mxu0 }
 0x947   :  { %v3846_v10 = vadd.f32 %v4310_v3, %v3845_v8  ;;  %v3853_v11 = vsel %vm3177_vm0, %v3849_v7, 0.0 }
 0x948   :  { %3854 = vadd.xlane.f32.xlu0 %v3853_v11  ;;  %v4675_v14 = vpop.f32.mrf.mxu0 }
 0x949   :  { %v3850_v52 = vadd.f32 %v3846_v10, %v3694_v20 }
 0x94b   :  { %v3856_v12 = vsel %vm3177_vm0, %v3850_v52, 0.0 }
 0x94c   :  { %3857 = vadd.xlane.f32.xlu1 %v3856_v12 }
 0x9d1   :  { %v3855_v21 = vpop.xlane.xlu0 %3854 }
 0x9d2   :  { %v3859_v13 = vmul.f32 0.03125, %v3855_v21 }
 0x9d4   :  { %v3861_v19 = vsub.f32 %v3849_v7, %v3859_v13 }
 0x9d5   :  { %v3858_v46 = vpop.xlane.xlu1 %3857 }
 0x9d6   :  { %v3860_v15 = vmul.f32 0.03125, %v3858_v46  ;;  %v3863_v16 = vmul.f32 %v3861_v19, %v3861_v19 }
 0x9d8   :  { %v3862_v22 = vsub.f32 %v3850_v52, %v3860_v15  ;;  %v3865_v23 = vsel %vm3177_vm0, %v3863_v16, 0.0 }
 0x9d9   :  { %3866 = vadd.xlane.f32.xlu0 %v3865_v23 }
 0x9da   :  { %v3864_v24 = vmul.f32 %v3862_v22, %v3862_v22 }
 0x9dc   :  { %v3868_v25 = vsel %vm3177_vm0, %v3864_v24, 0.0 }
 0x9dd   :  { %3869 = vadd.xlane.f32.xlu1 %v3868_v25 }
 0x9ee   :  { %3969 = vrot.lane.b32.xlu1 %v6013_v31, %s4964_s1 }
 0xa62   :  { %v3867_v27 = vpop.xlane.xlu0 %3866 }
 0xa63   :  { %v3871_v28 = vmul.f32 0.03125, %v3867_v27 }
 0xa65   :  { %v3873_v41 = vadd.f32 1e-12, %v3871_v28 }
 0xa66   :  { %v3870_v29 = vpop.xlane.xlu1 %3869 }
 0xa67   :  { %4926 = vrsqrt.f32 %v3873_v41  ;;  %v3872_v30 = vmul.f32 0.03125, %v3870_v29 }
 0xa69   :  { %v3874_v32 = vadd.f32 1e-12, %v3872_v30 }
 0xa6a   :  { %v3970_v56 = vpop.permute.xlu1 %3969 }
 0xa6b   :  { %4928 = vrsqrt.f32 %v3874_v32 }
 0xa74   :  { %v4927_v31 = vpop.eup %4926 }
 0xa75   :  { %v3877_v20 = vmul.f32 %v4927_v31, %v3861_v19 }
 0xa77   :  { %v3883_v33 = vmul.f32 %v4316_v17, %v3877_v20 }
 0xa78   :  { %v4929_v34 = vpop.eup %4928 }
 0xa79   :  { %v3878_v35 = vmul.f32 %v4929_v34, %v3862_v22  ;;  %v3889_v37 = vadd.f32 %v4317_v9, %v3883_v33 }
 0xa7b   :  { %v3884_v36 = vmul.f32 %v4316_v17, %v3878_v35  ;;  %v3895_v39 = vpack.c.bf16 %v3889_v37, %v3889_v37 }
 0xa7d   :  { %v3890_v38 = vadd.f32 %v4317_v9, %v3884_v36  ;;  %v3904_v47 = vunpack.c.l.b16 %v3895_v39 }
 0xa7f   :  { %v3896_v40 = vpack.c.bf16 %v3890_v38, %v3890_v38 }
 0xa81   :  { %v3905_v42 = vunpack.c.l.b16 %v3896_v40 }
 0xa83   :  { %v3906_v43 = vrot.slane %v3905_v42, 7 }
 0xa85   :  { %v3908_v45 = vsel %vm3907_vm4, %v3906_v43, %v3904_v47 }
 0xa86   :  { %v3909_v18 = vpack.c.b16 %v3908_v45, %v3908_v45 }
 0xa88   :  { %4681 = vmatmul.mubr.msk.bf16.vlgmr.msra.gmra.mxu1 %vm3177_vm0, %v3909_v18 }
 0xb48   :  { %v3959_v50 = vpop.f32.mrf.mxu1 }
 0xb49   :  { %v3960_v53 = vadd.f32 %v4318_v48, %v3959_v50 }
 0xb4a   :  { %v4682_v54 = vpop.f32.mrf.mxu1 }
 0xb4b   :  { %4930 = vtanh.f32 %v3960_v53 }
 0xb4c   :  { %v3962_v51 = vpop.f32.mrf.mxu1 }
 0xb4e   :  { %v4683_v55 = vpop.f32.mrf.mxu1 }
 0xb58   :  { %v4931_v49 = vpop.eup %4930 }
 0xb59   :  { %3967 = vst.msk [vmem:[#allocation2] sm:$0x3] %vm3966_vm5, %v4931_v49 }
 0xb5a   :  { %3973 = vst.msk [vmem:[#allocation2] sm:$0x3] %vm3972_vm6, %v3970_v56 }
 0xb5b   :  { %4945 = shalt.err (!%p4942_p4)
}
 0xb5c   :  { %3983 = dma.vmem_to_hbm [thread:$0]  %s3981_s15, 32, %s6153_s8, [#allocation3]  }
 0xb5d   :  { %4954 = dma.done.wait [#allocation3], 32  }
 0xb5e   :  { %4955 = vsyncadd [#allocation3], 4294967264 }
 0xb5f   :  { %3987 = vsyncpa [#allocation3], 1 }

</bundles_post_ra>
